<compile_context>
chip_gen: v5e
topology: v5e:2x2
jax: 0.10.0
libtpu: 0.0.40
codegen_flags: <defaults>
</compile_context>

<pallas_src>
import functools
import math

import jax
import jax.numpy as jnp
from jax.experimental import pallas as pl
from jax.experimental.pallas import tpu as pltpu


def _round_up(v, m):
    return ((v + m - 1) // m) * m


def _nbytes(shape, dtype):
    return math.prod(shape) * jnp.dtype(dtype).itemsize


def _vmem_limit(blocks, headroom=2, floor=4 << 20, cap=48 << 20):
    """Scoped-VMEM request derived from the double-buffered block footprint."""
    need = sum(2 * _nbytes(s, dt) for s, dt in blocks)
    return int(min(max(headroom * need, floor), cap))


def _pad2d(a, rows, cols, dtype):
    a = a.astype(dtype)
    pr, pc = rows - a.shape[0], cols - a.shape[1]
    if pr or pc:  # skip the extra read+write when already tile-aligned
        a = jnp.pad(a, ((0, pr), (0, pc)))
    return a


def _pick_tile(n):
    """Largest tile in {512,256} giving >=2 row tiles and <=~6% row padding, else 128."""
    for tm in (512, 256):
        n_pad = _round_up(n, tm)
        if n_pad >= 2 * tm and (n_pad - n) * 16 <= n_pad:
            return tm, n_pad
    return 128, _round_up(n, 128)


# --------------------------------------------------------------------------- #
# Pass 1: row sums and column sums of A (for degrees of sym(A)+I), 2-D tiled.  #
# rowsum accumulates in an (tm,1) block resident across the inner j axis;      #
# colsum accumulates into a tiny (1, n_pad) block resident across the grid.    #
# Both grid axes MUST stay "arbitrary" (sequential) for these accumulators.    #
# --------------------------------------------------------------------------- #
def _degree_kernel(a_ref, rowsum_ref, colsum_ref, *, tk):
    i = pl.program_id(0)
    j = pl.program_id(1)
    a = a_ref[...].astype(jnp.float32)                      # (tm, tk)

    @pl.when(j == 0)
    def _init_rows():
        rowsum_ref[...] = jnp.zeros_like(rowsum_ref)

    rowsum_ref[...] += jnp.sum(a, axis=1, keepdims=True)    # (tm, 1)

    @pl.when((i == 0) & (j == 0))
    def _init_cols():
        colsum_ref[...] = jnp.zeros_like(colsum_ref)

    j_off = pl.multiple_of(j * tk, tk)
    colsum_ref[:, pl.ds(j_off, tk)] += jnp.sum(a, axis=0, keepdims=True)  # (1, tk)


# --------------------------------------------------------------------------- #
# Pass 2: z = adj_hat @ x = D^-1/2 (0.5*(A + A^T)) D^-1/2 x + D^-1 x           #
# --------------------------------------------------------------------------- #
def _z_kernel(a_ik_ref, a_ki_ref, xk_ref, xi_ref, dk_ref, di_ref, z_ref,
              *, matmul_dtype):
    k = pl.program_id(1)

    @pl.when(k == 0)
    def _init():
        z_ref[...] = jnp.zeros_like(z_ref)

    # xs_k = D^-1/2[k-tile] * x[k-tile]   (both streamed as k-tiles)
    xs = dk_ref[...] * xk_ref[...]                           # (tk, d_pad) f32
    if matmul_dtype is not None:
        xs = xs.astype(matmul_dtype)                         # A tiles already bf16

    a_ik = a_ik_ref[...]                                     # A[i-tile, k-tile]
    a_ki = a_ki_ref[...]                                     # A[k-tile, i-tile]

    # 0.5 * (A @ xs + A^T @ xs); the transpose is expressed as a contraction over
    # axis 0 of the (k, i) block -> MXU work, no jnp transpose in the kernel.
    z_ref[...] += 0.5 * (
        jnp.dot(a_ik, xs, preferred_element_type=jnp.float32)
        + jax.lax.dot_general(
            a_ki, xs,
            dimension_numbers=(((0,), (0,)), ((), ())),
            preferred_element_type=jnp.float32))

    # Finalize this row tile: scale by D^-1/2 and add the folded self-loop D^-1 x.
    @pl.when(k == pl.num_programs(1) - 1)
    def _finalize():
        di = di_ref[...]                                     # (tm, 1)
        z_ref[...] = di * z_ref[...] + (di * di) * xi_ref[...]


# --------------------------------------------------------------------------- #
# Pass 3: y = Coefficient2 @ z                                                 #
# --------------------------------------------------------------------------- #
def _y_kernel(c_ref, z_ref, y_ref, *, matmul_dtype):
    k = pl.program_id(1)

    @pl.when(k == 0)
    def _init():
        y_ref[...] = jnp.zeros_like(y_ref)

    z = z_ref[...]
    if matmul_dtype is not None:
        z = z.astype(matmul_dtype)                           # C tile already bf16
    y_ref[...] += jnp.dot(c_ref[...], z, preferred_element_type=jnp.float32)


def self_expression2_forward(coefficient2, A, x, *, matmul_dtype=jnp.bfloat16):
    """y = Coefficient2 @ adjacent_mat(sym(A)) @ x, as three tiled Pallas passes.

    matmul_dtype: storage/MXU dtype for A and Coefficient2 (f32 accumulation).
                  Default bfloat16; pass None for a pure-f32 path.
    """
    n = A.shape[0]
    d = x.shape[1]
    f32 = jnp.float32
    mat_dt = f32 if matmul_dtype is None else matmul_dtype

    d_pad = _round_up(d, 128)            # lane-dense output (avoid vst.msk)
    tm, n_pad = _pick_tile(n)
    tk = tm
    nr = n_pad // tm
    nc = n_pad // tk

    # Padded / narrowed operand copies (no-ops when already aligned / f32).
    A_p = _pad2d(A, n_pad, n_pad, mat_dt)
    C_p = _pad2d(coefficient2, n_pad, n_pad, mat_dt)
    x_p = _pad2d(x, n_pad, d_pad, f32)

    # ---- Pass 1: row/col sums of A (degrees). ---------------------------------
    vmem1 = _vmem_limit([((tm, tk), mat_dt), ((tm, 1), f32), ((1, n_pad), f32)])
    rowsum, colsum = pl.pallas_call(
        functools.partial(_degree_kernel, tk=tk),
        out_shape=(jax.ShapeDtypeStruct((n_pad, 1), f32),
                   jax.ShapeDtypeStruct((1, n_pad), f32)),
        grid=(nr, nc),
        in_specs=[pl.BlockSpec((tm, tk), lambda i, j: (i, j))],
        out_specs=(pl.BlockSpec((tm, 1), lambda i, j: (i, 0)),
                   pl.BlockSpec((1, n_pad), lambda i, j: (0, 0))),
        compiler_params=pltpu.CompilerParams(
            dimension_semantics=("arbitrary", "arbitrary"),  # sequential: accumulators
            vmem_limit_bytes=vmem1),
        cost_estimate=pl.CostEstimate(
            flops=2 * n_pad * n_pad, transcendentals=0,
            bytes_accessed=_nbytes((n_pad, n_pad), mat_dt) + 8 * n_pad),
    )(A_p)

    # O(n) glue: deg = 0.5*(rowsum + colsum^T) + 1 (self-loop).
    # NOTE: the clamp guards rsqrt against non-positive degrees (possible if A has
    # negative entries); the PyTorch reference would produce inf/NaN there instead.
    deg = 0.5 * (rowsum + colsum.T) + 1.0
    d_is = jax.lax.rsqrt(jnp.maximum(deg, 1e-12))            # (n_pad, 1) = D^-1/2

    # ---- Pass 2: z = adj_hat @ x. ----------------------------------------------
    vmem2 = _vmem_limit([((tm, tk), mat_dt), ((tk, tm), mat_dt),
                         ((tk, d_pad), f32), ((tm, d_pad), f32),
                         ((tk, 1), f32), ((tm, 1), f32),
                         ((tm, d_pad), f32)])
    z = pl.pallas_call(
        functools.partial(_z_kernel, matmul_dtype=matmul_dtype),
        out_shape=jax.ShapeDtypeStruct((n_pad, d_pad), f32),
        grid=(nr, nc),
        in_specs=[
            pl.BlockSpec((tm, tk), lambda i, k: (i, k)),      # A[i, k]
            pl.BlockSpec((tk, tm), lambda i, k: (k, i)),      # A[k, i]  (A^T path)
            pl.BlockSpec((tk, d_pad), lambda i, k: (k, 0)),   # x[k-tile]
            pl.BlockSpec((tm, d_pad), lambda i, k: (i, 0)),   # x[i-tile]   (finalize)
            pl.BlockSpec((tk, 1), lambda i, k: (k, 0)),       # D^-1/2[k-tile]
            pl.BlockSpec((tm, 1), lambda i, k: (i, 0)),       # D^-1/2[i-tile] (finalize)
        ],
        out_specs=pl.BlockSpec((tm, d_pad), lambda i, k: (i, 0)),
        compiler_params=pltpu.CompilerParams(
            dimension_semantics=("parallel", "arbitrary"),
            vmem_limit_bytes=vmem2),
        cost_estimate=pl.CostEstimate(
            flops=4 * n_pad * n_pad * d_pad, transcendentals=0,
            bytes_accessed=2 * _nbytes((n_pad, n_pad), mat_dt)
                           + (nr + 2) * _nbytes((n_pad, d_pad), f32)),
    )(A_p, A_p, x_p, x_p, d_is, d_is)

    # ---- Pass 3: y = Coefficient2 @ z. ------------------------------------------
    vmem3 = _vmem_limit([((tm, tk), mat_dt), ((tk, d_pad), f32), ((tm, d_pad), f32)])
    y = pl.pallas_call(
        functools.partial(_y_kernel, matmul_dtype=matmul_dtype),
        out_shape=jax.ShapeDtypeStruct((n_pad, d_pad), f32),
        grid=(nr, nc),
        in_specs=[
            pl.BlockSpec((tm, tk), lambda i, k: (i, k)),      # C[i, k]
            pl.BlockSpec((tk, d_pad), lambda i, k: (k, 0)),   # z[k-tile]
        ],
        out_specs=pl.BlockSpec((tm, d_pad), lambda i, k: (i, 0)),
        compiler_params=pltpu.CompilerParams(
            dimension_semantics=("parallel", "arbitrary"),
            vmem_limit_bytes=vmem3),
        cost_estimate=pl.CostEstimate(
            flops=2 * n_pad * n_pad * d_pad, transcendentals=0,
            bytes_accessed=_nbytes((n_pad, n_pad), mat_dt)
                           + (nr + 1) * _nbytes((n_pad, d_pad), f32)),
    )(C_p, z)

    return y[:n, :d]


def self_expression2_reference(coefficient2, A, x):
    # Pure-JAX reference of the same (assumed) semantics, all in f32.
    n = A.shape[0]
    adj = 0.5 * (A + A.T) + jnp.eye(n, dtype=A.dtype)
    deg = jnp.sum(adj, axis=1)
    d_is = jax.lax.rsqrt(deg)
    adj_norm = adj * d_is[:, None] * d_is[None, :]
    return coefficient2 @ (adj_norm @ x)


if __name__ == "__main__":
    # Small but non-trivial: n=256 exercises a (2, 2) grid of 128-wide tiles.
    n, d = 256, 32

    key = jax.random.PRNGKey(0)
    k_a, k_x, k_c = jax.random.split(key, 3)

    # Module __init__ (init_adj=None): Coefficient2 = 1e-8 * ones, A ~ U[0,1).
    coefficient2 = 1e-8 * jnp.ones((n, n), dtype=jnp.float32)
    A = jax.random.uniform(k_a, (n, n), dtype=jnp.float32)
    x = jax.random.normal(k_x, (n, d), dtype=jnp.float32)
    C_rand = jax.random.normal(k_c, (n, n), dtype=jnp.float32)

    fwd_f32 = jax.jit(functools.partial(self_expression2_forward, matmul_dtype=None))
    fwd_bf16 = jax.jit(functools.partial(self_expression2_forward,
                                         matmul_dtype=jnp.bfloat16))  # default perf path

    def rel_err(a, b):
        return float(jnp.linalg.norm(a - b) / (jnp.linalg.norm(b) + 1e-30))

    y_ref1 = self_expression2_reference(coefficient2, A, x)
    y_ref2 = self_expression2_reference(C_rand, A, x)

    # f32 path: tight check of the algorithm.
    y1 = jax.block_until_ready(fwd_f32(coefficient2, A, x))
    y2 = jax.block_until_ready(fwd_f32(C_rand, A, x))
    assert y1.shape == (n, d)
    assert rel_err(y1, y_ref1) < 1e-5, f"f32 mismatch (module-init C): {rel_err(y1, y_ref1)}"
    assert rel_err(y2, y_ref2) < 1e-5, f"f32 mismatch (random C): {rel_err(y2, y_ref2)}"

    # Default bf16-operand path: looser tolerance tier (f32 accumulation).
    y3 = jax.block_until_ready(fwd_bf16(coefficient2, A, x))
    y4 = jax.block_until_ready(fwd_bf16(C_rand, A, x))
    assert y3.shape == (n, d)
    assert rel_err(y3, y_ref1) < 3e-2, f"bf16 mismatch (module-init C): {rel_err(y3, y_ref1)}"
    assert rel_err(y4, y_ref2) < 3e-2, f"bf16 mismatch (random C): {rel_err(y4, y_ref2)}"

    print("KERNEL_OK")
</pallas_src>

<mosaic_0001>
module attributes {stable_mosaic.version = 11 : i64} {
  func.func @_degree_kernel(%arg0: i32, %arg1: i32, %arg2: memref<128x128xf32, #tpu.memory_space<vmem>>, %arg3: memref<128x1xf32, #tpu.memory_space<vmem>>, %arg4: memref<1x256xf32, #tpu.memory_space<vmem>>) attributes {dimension_semantics = [#tpu.dimension_semantics<arbitrary>, #tpu.dimension_semantics<arbitrary>], iteration_bounds = array<i64: 2, 2>, scalar_prefetch = 0 : i64, scratch_operands = 0 : i64, tpu.core_type = #tpu.core_type<tc>, window_params = [{transform_indices = @transform_0, window_bounds = array<i64: 128, 128>}, {transform_indices = @transform_1, window_bounds = array<i64: 128, 1>}, {pipeline_mode = #tpu.pipeline_mode<synchronous>, transform_indices = @transform_2, window_bounds = array<i64: 1, 256>}]} {
    %c0 = arith.constant 0 : index
    %c0_0 = arith.constant 0 : index
    %0 = vector.load %arg2[%c0, %c0_0] : memref<128x128xf32, #tpu.memory_space<vmem>>, vector<128x128xf32>
    %c0_i32 = arith.constant 0 : i32
    %1 = arith.cmpi eq, %arg1, %c0_i32 : i32
    %2 = arith.extui %1 : i1 to i32
    %c0_i32_1 = arith.constant 0 : i32
    %3 = arith.cmpi ne, %2, %c0_i32_1 : i32
    scf.if %3 {
      %cst_12 = arith.constant 0.000000e+00 : f32
      %23 = vector.broadcast %cst_12 : f32 to vector<128x1xf32>
      %c0_13 = arith.constant 0 : index
      %c0_14 = arith.constant 0 : index
      %24 = vector.load %arg3[%c0_13, %c0_14] : memref<128x1xf32, #tpu.memory_space<vmem>>, vector<128x1xf32>
      tpu.vector_store %arg3[%c0_13, %c0_14], %23 {strides = array<i32>} : memref<128x1xf32, #tpu.memory_space<vmem>>, vector<128x1xf32>,
    } else {
    }
    %c0_2 = arith.constant 0 : index
    %c0_3 = arith.constant 0 : index
    %4 = vector.load %arg3[%c0_2, %c0_3] : memref<128x1xf32, #tpu.memory_space<vmem>>, vector<128x1xf32>
    %cst = arith.constant dense<0.000000e+00> : vector<128xf32>
    %5 = vector.multi_reduction <add>, %0, %cst [1] : vector<128x128xf32> to vector<128xf32>
    %6 = vector.shape_cast %5 : vector<128xf32> to vector<128x1xf32>
    %7 = arith.addf %4, %6 : vector<128x1xf32>
    %c0_4 = arith.constant 0 : index
    %c0_5 = arith.constant 0 : index
    %8 = vector.load %arg3[%c0_4, %c0_5] : memref<128x1xf32, #tpu.memory_space<vmem>>, vector<128x1xf32>
    tpu.vector_store %arg3[%c0_4, %c0_5], %7 {strides = array<i32>} : memref<128x1xf32, #tpu.memory_space<vmem>>, vector<128x1xf32>,
    %c0_i32_6 = arith.constant 0 : i32
    %9 = arith.cmpi eq, %arg0, %c0_i32_6 : i32
    %c0_i32_7 = arith.constant 0 : i32
    %10 = arith.cmpi eq, %arg1, %c0_i32_7 : i32
    %11 = arith.andi %9, %10 : i1
    %12 = arith.extui %11 : i1 to i32
    %c0_i32_8 = arith.constant 0 : i32
    %13 = arith.cmpi ne, %12, %c0_i32_8 : i32
    scf.if %13 {
      %cst_12 = arith.constant 0.000000e+00 : f32
      %23 = vector.broadcast %cst_12 : f32 to vector<1x256xf32>
      %c0_13 = arith.constant 0 : index
      %c0_14 = arith.constant 0 : index
      %24 = vector.load %arg4[%c0_13, %c0_14] : memref<1x256xf32, #tpu.memory_space<vmem>>, vector<1x256xf32>
      tpu.vector_store %arg4[%c0_13, %c0_14], %23 {strides = array<i32>} : memref<1x256xf32, #tpu.memory_space<vmem>>, vector<1x256xf32>,
    } else {
    }
    %c128_i32 = arith.constant 128 : i32
    %14 = arith.muli %arg1, %c128_i32 : i32
    %15 = tpu.assume_multiple %14, 128 : i32
    %c0_9 = arith.constant 0 : index
    %16 = arith.index_cast %15 : i32 to index
    %17 = vector.load %arg4[%c0_9, %16] : memref<1x256xf32, #tpu.memory_space<vmem>>, vector<1x128xf32>
    %cst_10 = arith.constant dense<0.000000e+00> : vector<128xf32>
    %18 = vector.multi_reduction <add>, %0, %cst_10 [0] : vector<128x128xf32> to vector<128xf32>
    %19 = vector.shape_cast %18 : vector<128xf32> to vector<1x128xf32>
    %20 = arith.addf %17, %19 : vector<1x128xf32>
    %c0_11 = arith.constant 0 : index
    %21 = arith.index_cast %15 : i32 to index
    %22 = vector.load %arg4[%c0_11, %21] : memref<1x256xf32, #tpu.memory_space<vmem>>, vector<1x128xf32>
    tpu.vector_store %arg4[%c0_11, %21], %20 {strides = array<i32>} : memref<1x256xf32, #tpu.memory_space<vmem>>, vector<1x128xf32>,
    return
  }
  func.func @transform_0(%arg0: i32, %arg1: i32) -> (i32, i32) {
    %c0_i32 = arith.constant 0 : i32
    return %arg0, %arg1 : i32, i32
  }
  func.func @transform_1(%arg0: i32, %arg1: i32) -> (i32, i32) {
    %c0_i32 = arith.constant 0 : i32
    %c0_i32_0 = arith.constant 0 : i32
    return %arg0, %c0_i32 : i32, i32
  }
  func.func @transform_2(%arg0: i32, %arg1: i32) -> (i32, i32) {
    %c0_i32 = arith.constant 0 : i32
    %c0_i32_0 = arith.constant 0 : i32
    %c0_i32_1 = arith.constant 0 : i32
    return %c0_i32, %c0_i32_0 : i32, i32
  }
}

module attributes {stable_mosaic.version = 11 : i64} {
  func.func @_y_kernel(%arg0: i32, %arg1: i32, %arg2: memref<128x128xf32, #tpu.memory_space<vmem>>, %arg3: memref<128x128xf32, #tpu.memory_space<vmem>>, %arg4: memref<128x128xf32, #tpu.memory_space<vmem>>) attributes {dimension_semantics = [#tpu.dimension_semantics<parallel>, #tpu.dimension_semantics<arbitrary>], iteration_bounds = array<i64: 2, 2>, scalar_prefetch = 0 : i64, scratch_operands = 0 : i64, tpu.core_type = #tpu.core_type<tc>, window_params = [{transform_indices = @transform_0, window_bounds = array<i64: 128, 128>}, {transform_indices = @transform_1, window_bounds = array<i64: 128, 128>}, {transform_indices = @transform_2, window_bounds = array<i64: 128, 128>}]} {
    %c0_i32 = arith.constant 0 : i32
    %0 = arith.cmpi eq, %arg1, %c0_i32 : i32
    %1 = arith.extui %0 : i1 to i32
    %c0_i32_0 = arith.constant 0 : i32
    %2 = arith.cmpi ne, %1, %c0_i32_0 : i32
    scf.if %2 {
      %cst_8 = arith.constant 0.000000e+00 : f32
      %9 = vector.broadcast %cst_8 : f32 to vector<128x128xf32>
      %c0_9 = arith.constant 0 : index
      %c0_10 = arith.constant 0 : index
      %10 = vector.load %arg4[%c0_9, %c0_10] : memref<128x128xf32, #tpu.memory_space<vmem>>, vector<128x128xf32>
      tpu.vector_store %arg4[%c0_9, %c0_10], %9 {strides = array<i32>} : memref<128x128xf32, #tpu.memory_space<vmem>>, vector<128x128xf32>,
    } else {
    }
    %c0 = arith.constant 0 : index
    %c0_1 = arith.constant 0 : index
    %3 = vector.load %arg3[%c0, %c0_1] : memref<128x128xf32, #tpu.memory_space<vmem>>, vector<128x128xf32>
    %c0_2 = arith.constant 0 : index
    %c0_3 = arith.constant 0 : index
    %4 = vector.load %arg4[%c0_2, %c0_3] : memref<128x128xf32, #tpu.memory_space<vmem>>, vector<128x128xf32>
    %c0_4 = arith.constant 0 : index
    %c0_5 = arith.constant 0 : index
    %5 = vector.load %arg2[%c0_4, %c0_5] : memref<128x128xf32, #tpu.memory_space<vmem>>, vector<128x128xf32>
    %cst = arith.constant dense<0.000000e+00> : vector<128x128xf32>
    %6 = tpu.matmul %5, %3, %cst {dimension_numbers = #tpu.dot_dimension_numbers<[1], [0], [0], [1], [0, 0, 1, 1], [], []>} : vector<128x128xf32>, vector<128x128xf32>, vector<128x128xf32> -> vector<128x128xf32>
    %7 = arith.addf %4, %6 : vector<128x128xf32>
    %c0_6 = arith.constant 0 : index
    %c0_7 = arith.constant 0 : index
    %8 = vector.load %arg4[%c0_6, %c0_7] : memref<128x128xf32, #tpu.memory_space<vmem>>, vector<128x128xf32>
    tpu.vector_store %arg4[%c0_6, %c0_7], %7 {strides = array<i32>} : memref<128x128xf32, #tpu.memory_space<vmem>>, vector<128x128xf32>,
    return
  }
  func.func @transform_0(%arg0: i32, %arg1: i32) -> (i32, i32) {
    %c0_i32 = arith.constant 0 : i32
    return %arg0, %arg1 : i32, i32
  }
  func.func @transform_1(%arg0: i32, %arg1: i32) -> (i32, i32) {
    %c0_i32 = arith.constant 0 : i32
    %c0_i32_0 = arith.constant 0 : i32
    return %arg1, %c0_i32 : i32, i32
  }
  func.func @transform_2(%arg0: i32, %arg1: i32) -> (i32, i32) {
    %c0_i32 = arith.constant 0 : i32
    %c0_i32_0 = arith.constant 0 : i32
    return %arg0, %c0_i32 : i32, i32
  }
}

module attributes {stable_mosaic.version = 11 : i64} {
  func.func @_z_kernel(%arg0: i32, %arg1: i32, %arg2: memref<128x128xf32, #tpu.memory_space<vmem>>, %arg3: memref<128x128xf32, #tpu.memory_space<vmem>>, %arg4: memref<128x128xf32, #tpu.memory_space<vmem>>, %arg5: memref<128x128xf32, #tpu.memory_space<vmem>>, %arg6: memref<128x1xf32, #tpu.memory_space<vmem>>, %arg7: memref<128x1xf32, #tpu.memory_space<vmem>>, %arg8: memref<128x128xf32, #tpu.memory_space<vmem>>) attributes {dimension_semantics = [#tpu.dimension_semantics<parallel>, #tpu.dimension_semantics<arbitrary>], iteration_bounds = array<i64: 2, 2>, scalar_prefetch = 0 : i64, scratch_operands = 0 : i64, tpu.core_type = #tpu.core_type<tc>, window_params = [{transform_indices = @transform_0, window_bounds = array<i64: 128, 128>}, {transform_indices = @transform_1, window_bounds = array<i64: 128, 128>}, {transform_indices = @transform_2, window_bounds = array<i64: 128, 128>}, {transform_indices = @transform_3, window_bounds = array<i64: 128, 128>}, {transform_indices = @transform_4, window_bounds = array<i64: 128, 1>}, {transform_indices = @transform_5, window_bounds = array<i64: 128, 1>}, {transform_indices = @transform_6, window_bounds = array<i64: 128, 128>}]} {
    %c0_i32 = arith.constant 0 : i32
    %0 = arith.cmpi eq, %arg1, %c0_i32 : i32
    %1 = arith.extui %0 : i1 to i32
    %c0_i32_0 = arith.constant 0 : i32
    %2 = arith.cmpi ne, %1, %c0_i32_0 : i32
    scf.if %2 {
      %cst_15 = arith.constant 0.000000e+00 : f32
      %20 = vector.broadcast %cst_15 : f32 to vector<128x128xf32>
      %c0_16 = arith.constant 0 : index
      %c0_17 = arith.constant 0 : index
      %21 = vector.load %arg8[%c0_16, %c0_17] : memref<128x128xf32, #tpu.memory_space<vmem>>, vector<128x128xf32>
      tpu.vector_store %arg8[%c0_16, %c0_17], %20 {strides = array<i32>} : memref<128x128xf32, #tpu.memory_space<vmem>>, vector<128x128xf32>,
    } else {
    }
    %c0 = arith.constant 0 : index
    %c0_1 = arith.constant 0 : index
    %3 = vector.load %arg6[%c0, %c0_1] : memref<128x1xf32, #tpu.memory_space<vmem>>, vector<128x1xf32>
    %c0_2 = arith.constant 0 : index
    %c0_3 = arith.constant 0 : index
    %4 = vector.load %arg4[%c0_2, %c0_3] : memref<128x128xf32, #tpu.memory_space<vmem>>, vector<128x128xf32>
    %5 = vector.broadcast %3 : vector<128x1xf32> to vector<128x128xf32>
    %6 = arith.mulf %5, %4 : vector<128x128xf32>
    %c0_4 = arith.constant 0 : index
    %c0_5 = arith.constant 0 : index
    %7 = vector.load %arg2[%c0_4, %c0_5] : memref<128x128xf32, #tpu.memory_space<vmem>>, vector<128x128xf32>
    %c0_6 = arith.constant 0 : index
    %c0_7 = arith.constant 0 : index
    %8 = vector.load %arg3[%c0_6, %c0_7] : memref<128x128xf32, #tpu.memory_space<vmem>>, vector<128x128xf32>
    %c0_8 = arith.constant 0 : index
    %c0_9 = arith.constant 0 : index
    %9 = vector.load %arg8[%c0_8, %c0_9] : memref<128x128xf32, #tpu.memory_space<vmem>>, vector<128x128xf32>
    %cst = arith.constant dense<0.000000e+00> : vector<128x128xf32>
    %10 = tpu.matmul %7, %6, %cst {dimension_numbers = #tpu.dot_dimension_numbers<[1], [0], [0], [1], [0, 0, 1, 1], [], []>} : vector<128x128xf32>, vector<128x128xf32>, vector<128x128xf32> -> vector<128x128xf32>
    %cst_10 = arith.constant dense<0.000000e+00> : vector<128x128xf32>
    %11 = tpu.matmul %8, %6, %cst_10 {dimension_numbers = #tpu.dot_dimension_numbers<[0], [0], [1], [1], [0, 1, 1, 1], [], []>} : vector<128x128xf32>, vector<128x128xf32>, vector<128x128xf32> -> vector<128x128xf32>
    %12 = arith.addf %10, %11 : vector<128x128xf32>
    %cst_11 = arith.constant 5.000000e-01 : f32
    %13 = vector.broadcast %cst_11 : f32 to vector<128x128xf32>
    %14 = arith.mulf %13, %12 : vector<128x128xf32>
    %15 = arith.addf %9, %14 : vector<128x128xf32>
    %c0_12 = arith.constant 0 : index
    %c0_13 = arith.constant 0 : index
    %16 = vector.load %arg8[%c0_12, %c0_13] : memref<128x128xf32, #tpu.memory_space<vmem>>, vector<128x128xf32>
    tpu.vector_store %arg8[%c0_12, %c0_13], %15 {strides = array<i32>} : memref<128x128xf32, #tpu.memory_space<vmem>>, vector<128x128xf32>,
    %c1_i32 = arith.constant 1 : i32
    %17 = arith.cmpi eq, %arg1, %c1_i32 : i32
    %18 = arith.extui %17 : i1 to i32
    %c0_i32_14 = arith.constant 0 : i32
    %19 = arith.cmpi ne, %18, %c0_i32_14 : i32
    scf.if %19 {
      %c0_15 = arith.constant 0 : index
      %c0_16 = arith.constant 0 : index
      %20 = vector.load %arg7[%c0_15, %c0_16] : memref<128x1xf32, #tpu.memory_space<vmem>>, vector<128x1xf32>
      %c0_17 = arith.constant 0 : index
      %c0_18 = arith.constant 0 : index
      %21 = vector.load %arg8[%c0_17, %c0_18] : memref<128x128xf32, #tpu.memory_space<vmem>>, vector<128x128xf32>
      %22 = vector.broadcast %20 : vector<128x1xf32> to vector<128x128xf32>
      %23 = arith.mulf %22, %21 : vector<128x128xf32>
      %24 = arith.mulf %20, %20 : vector<128x1xf32>
      %c0_19 = arith.constant 0 : index
      %c0_20 = arith.constant 0 : index
      %25 = vector.load %arg5[%c0_19, %c0_20] : memref<128x128xf32, #tpu.memory_space<vmem>>, vector<128x128xf32>
      %26 = vector.broadcast %24 : vector<128x1xf32> to vector<128x128xf32>
      %27 = arith.mulf %26, %25 : vector<128x128xf32>
      %28 = arith.addf %23, %27 : vector<128x128xf32>
      %c0_21 = arith.constant 0 : index
      %c0_22 = arith.constant 0 : index
      %29 = vector.load %arg8[%c0_21, %c0_22] : memref<128x128xf32, #tpu.memory_space<vmem>>, vector<128x128xf32>
      tpu.vector_store %arg8[%c0_21, %c0_22], %28 {strides = array<i32>} : memref<128x128xf32, #tpu.memory_space<vmem>>, vector<128x128xf32>,
    } else {
    }
    return
  }
  func.func @transform_0(%arg0: i32, %arg1: i32) -> (i32, i32) {
    %c0_i32 = arith.constant 0 : i32
    return %arg0, %arg1 : i32, i32
  }
  func.func @transform_1(%arg0: i32, %arg1: i32) -> (i32, i32) {
    %c0_i32 = arith.constant 0 : i32
    return %arg1, %arg0 : i32, i32
  }
  func.func @transform_2(%arg0: i32, %arg1: i32) -> (i32, i32) {
    %c0_i32 = arith.constant 0 : i32
    %c0_i32_0 = arith.constant 0 : i32
    return %arg1, %c0_i32 : i32, i32
  }
  func.func @transform_3(%arg0: i32, %arg1: i32) -> (i32, i32) {
    %c0_i32 = arith.constant 0 : i32
    %c0_i32_0 = arith.constant 0 : i32
    return %arg0, %c0_i32 : i32, i32
  }
  func.func @transform_4(%arg0: i32, %arg1: i32) -> (i32, i32) {
    %c0_i32 = arith.constant 0 : i32
    %c0_i32_0 = arith.constant 0 : i32
    return %arg1, %c0_i32 : i32, i32
  }
  func.func @transform_5(%arg0: i32, %arg1: i32) -> (i32, i32) {
    %c0_i32 = arith.constant 0 : i32
    %c0_i32_0 = arith.constant 0 : i32
    return %arg0, %c0_i32 : i32, i32
  }
  func.func @transform_6(%arg0: i32, %arg1: i32) -> (i32, i32) {
    %c0_i32 = arith.constant 0 : i32
    %c0_i32_0 = arith.constant 0 : i32
    return %arg0, %c0_i32 : i32, i32
  }
}

</mosaic_0001>

<bundles_post_ra>
// kernel: self_expression2_forward.3
= control target key start
LH: loop header
LB: loop body
LE: loop exit
PB: predicated region body
PF: predicated region fallthrough
CT: control target
= control target key end

     0   :  { %8 = vsyncpa [#allocation3], 0  ;;  %s917_s0 = inlined_call_operand.hbm [shape: f32[256,256], index: 0, kind: input, shape index: {}]   ;;  %s918_s1 = inlined_call_operand.vmem [shape: f32[256,1], index: 1, kind: output, shape index: {0}]   ;;  %s919_s2 = inlined_call_operand.vmem [shape: f32[1,256], index: 2, kind: output, shape index: {1}]  }
   0x1   :  { %10 = vsyncpa [#allocation3 + $0x1], 0  ;;  %s641_s9 = smov 0   ;;  %s643_s10 = smov 0  }
   0x2   :  { %s645_s11 = smov 0   ;;  %s647_s12 = smov 0  }
   0x3   :  { %s649_s13 = smov 0   ;;  %s651_s14 = smov 0  }
   0x4   :  { %s653_s15 = smov 0   ;;  %s655_s16 = smov 0  }
   0x5 LB: > { %s430_s17 = sadd.s32 4294967295, %s619_s16   ;;  %s25_s18 = sadd.s32 1, %s611_s14  ;;  %s619_s16 = sphi %s655_s16, %s16_s16   ;;  %s615_s15 = sphi %s653_s15, %s929_s15   ;;  %s611_s14 = sphi %s651_s14, %s928_s14   ;;  %s607_s13 = sphi %s649_s13, %s927_s13   ;;  %s603_s12 = sphi %s647_s12, %s926_s12   ;;  %s599_s11 = sphi %s645_s11, %s925_s11   ;;  %s595_s10 = sphi %s643_s10, %s924_s10   ;;  %s591_s9 = sphi %s641_s9, %s923_s9  }
   0x6   : > { %p26_p0 = scmp.ge.s32.totalorder %s25_s18, 2  ;;  %s28_s19 = sadd.s32 1, %s615_s15 }
   0x7   : > { %s37_s20 = sadd.s32 1, %s599_s11  ;;  %p44_p1 = scmp.ne.s32.totalorder %s599_s11, %s595_s10 }
   0x8   : > { %s931_s18 = smov (%p26_p0, %s25_s18), 0  ;;  %s933_s19 = smov (!%p26_p0, %s28_s19), %s615_s15 }
   0x9   : > { %s33_s21 = ssub.s32 %s611_s14, %s931_s18  ;;  %p45_p2 = scmp.eq.s32.totalorder %s619_s16, 0 }
   0xa   : > { %p30_p3 = scmp.ge.s32.totalorder %s933_s19, 2  ;;  %p50_p4 = scmp.ne.s32.totalorder %s595_s10, %s591_s9 }
   0xb   : > { %p692_p5 = por %p45_p2, %p44_p1  ;;  %p51_p6 = scmp.eq.s32.totalorder %s430_s17, 0 }
   0xc   : > { %s935_s19 = smov (%p30_p3, %s933_s19), 0  ;;  %p453_p8 = scmp.lt.s32.totalorder %s619_s16, 4 }
   0xd   : > { %p698_p7 = por %p51_p6, %p50_p4  ;;  %s32_s24 = ssub.s32 %s615_s15, %s935_s19 }
   0xe   : > { %s34_s25 = sor.u32 %s33_s21, %s32_s24  ;;  %s121_s26 = sand.u32 1, %s599_s11  }
   0xf   : > { %p35_p9 = scmp.eq.s32.totalorder %s34_s25, 0  ;;  %s434_s27 = sshll.u32 %s121_s26, 7 }
  0x10   : > { %s446_s28 = sshll.u32 %s615_s15, 5  ;;  %s125_s4 = scalar_lea.vmem [#allocation2], %s434_s27 }
  0x11   : > { %s708_s29 = scalar_select %p35_p9, %s599_s11, %s37_s20  }
  0x12   : > { %s130_s30 = sadd.s32 %s611_s14, %s446_s28  ;;  %s135_s5 = sshll.u32 %s125_s4, 4  ;;  %s136_s5 = int_to_ptr.vmem [resolvable:$true] %s135_s5 }
  0x13   : > { %s437_s3 = sshll.u32 %s130_s30, 3  ;;  %p450_p10 = pnand %p453_p8, %p692_p5 }
  0x14   : > { %s132_s8 = scalar_lea.hbm %s917_s0, %s437_s3  ;;  %p438_p11 = scmp.ge.s32.totalorder %s619_s16, 1 }
  0x15   : > { %s133_s9 = sshll.u32 %s132_s8, 4  ;;  %s122_s17 = scalar_lea.sflag [#allocation3], %s121_s26  ;;  %s134_s9 = int_to_ptr.hbm [resolvable:$true] %s133_s9 }
  0x16   : > { %s621_s21 = smov 256   ;;  %s622_s20 = smov 128  }
  0x17   : > { %s623_s24 = smov 8   ;;  %p143_p12 = scmp.lt.s32.totalorder %s619_s16, 5 }
  0x18   : > { %452 = dma.hbm_to_vmem [thread:$0]  (!%p450_p10), %s134_s9, 2048, %s136_s5, %s122_s17, %s621_s21, %s622_s20, %s623_s24  }
  0x19   : > { %p144_p13 = pnand %p438_p11, %p143_p12 }
  0x1a   : > { %s149_s25 = sand.u32 (!%p144_p13), 1, %s595_s10  }
  0x1b   : > { %147 = sbr.rel (%p144_p13) target bundleno = 266 (0x10a), region = 24  ;;  %s439_s27 = sshll.u32 (!%p144_p13), %s149_s25, 7 }
  0x1c   : > { %s150_s28 = scalar_lea.sflag (!%p144_p13), [#allocation3], %s149_s25  ;;  %s153_s30 = scalar_lea.vmem (!%p144_p13), [#allocation2], %s439_s27 }
  0x20   : > { %586 = dma.done.wait (%p698_p7), %s150_s28, 2048  }
  0x21   : > { %588 = vsyncadd (%p698_p7), %s150_s28, 4294965248  ;;  %s440_s22 = sshll.u32 %s607_s13, 4  ;;  %p198_p0 = scmp.eq.s32.totalorder %s603_s12, 0  ;;  %v732_v0 = vld [vmem:[%s153_s30] sm:$0xff]  ;;  %v734_v1 = vld [vmem:[%s153_s30 + $0x8] sm:$0xff] }
  0x22   : > { %p177_p1 = scmp.lt.s32.totalorder %s440_s22, 31  ;;  %v736_v2 = vld [vmem:[%s153_s30 + $0x10] sm:$0xff]  ;;  %v738_v3 = vld [vmem:[%s153_s30 + $0x18] sm:$0xff]  ;;  %v740_v4 = vld [vmem:[%s153_s30 + $0x20] sm:$0xff]  ;;  %p442_p2 = scmp.ne.s32.totalorder %s603_s12, 0 }
  0x23   : > { %v742_v5 = vld [vmem:[%s153_s30 + $0x28] sm:$0xff]  ;;  %v744_v6 = vld [vmem:[%s153_s30 + $0x30] sm:$0xff]  ;;  %v746_v7 = vld [vmem:[%s153_s30 + $0x38] sm:$0xff] }
  0x24   : > { %s937_s22 = smov (!%p177_p1, %s440_s22), 31  ;;  %v748_v8 = vld [vmem:[%s153_s30 + $0x40] sm:$0xff]  ;;  %v750_v9 = vld [vmem:[%s153_s30 + $0x48] sm:$0xff]  ;;  %v752_v10 = vld [vmem:[%s153_s30 + $0x50] sm:$0xff]  ;;  %201 = sbr.rel (%p442_p2) target bundleno = 58 (0x3a), region = 32 }
  0x25   : > { %s441_s26 = sshll.u32 %s937_s22, 3  ;;  %v754_v11 = vld [vmem:[%s153_s30 + $0x58] sm:$0xff]  ;;  %v756_v12 = vld [vmem:[%s153_s30 + $0x60] sm:$0xff]  ;;  %v758_v13 = vld [vmem:[%s153_s30 + $0x68] sm:$0xff] }
  0x26   : > { %s730_s5 = scalar_lea.vmem %s918_s1, %s441_s26  ;;  %v760_v14 = vld [vmem:[%s153_s30 + $0x70] sm:$0xff]  ;;  %v762_v15 = vld [vmem:[%s153_s30 + $0x78] sm:$0xff] }
  0x29   : > { %vm202_vm0 = vcmask 7168   ;;  %v624_v16 = vmov 0.0  }
  0x2a   : > { %203 = vst.msk [vmem:[%s730_s5] sm:$0xff] %vm202_vm0, %v624_v16 }
  0x2b   : > { %204 = vst.msk [vmem:[%s730_s5 + $0x8] sm:$0xff] %vm202_vm0, %v624_v16 }
  0x2c   : > { %205 = vst.msk [vmem:[%s730_s5 + $0x10] sm:$0xff] %vm202_vm0, %v624_v16 }
  0x2d   : > { %206 = vst.msk [vmem:[%s730_s5 + $0x18] sm:$0xff] %vm202_vm0, %v624_v16 }
  0x2e   : > { %207 = vst.msk [vmem:[%s730_s5 + $0x20] sm:$0xff] %vm202_vm0, %v624_v16 }
  0x2f   : > { %208 = vst.msk [vmem:[%s730_s5 + $0x28] sm:$0xff] %vm202_vm0, %v624_v16 }
  0x30   : > { %209 = vst.msk [vmem:[%s730_s5 + $0x30] sm:$0xff] %vm202_vm0, %v624_v16 }
  0x31   : > { %210 = vst.msk [vmem:[%s730_s5 + $0x38] sm:$0xff] %vm202_vm0, %v624_v16 }
  0x32   : > { %211 = vst.msk [vmem:[%s730_s5 + $0x40] sm:$0xff] %vm202_vm0, %v624_v16 }
  0x33   : > { %212 = vst.msk [vmem:[%s730_s5 + $0x48] sm:$0xff] %vm202_vm0, %v624_v16 }
  0x34   : > { %213 = vst.msk [vmem:[%s730_s5 + $0x50] sm:$0xff] %vm202_vm0, %v624_v16 }
  0x35   : > { %214 = vst.msk [vmem:[%s730_s5 + $0x58] sm:$0xff] %vm202_vm0, %v624_v16 }
  0x36   : > { %215 = vst.msk [vmem:[%s730_s5 + $0x60] sm:$0xff] %vm202_vm0, %v624_v16 }
  0x37   : > { %216 = vst.msk [vmem:[%s730_s5 + $0x68] sm:$0xff] %vm202_vm0, %v624_v16 }
  0x38   : > { %217 = vst.msk [vmem:[%s730_s5 + $0x70] sm:$0xff] %vm202_vm0, %v624_v16 }
  0x39   : > { %218 = vst.msk [vmem:[%s730_s5 + $0x78] sm:$0xff] %vm202_vm0, %v624_v16 }
  0x3a PF: > { %235 = vadd.xlane.f32.xlu0 %v732_v0  ;;  %243 = vadd.xlane.f32.xlu2 %v740_v4  ;;  %p300_p3 = scmp.eq.s32.totalorder %s607_s13, 0  ;;  %v219_v17 = vld [vmem:[%s730_s5] sm:$0xff]  ;;  %v221_v19 = vld [vmem:[%s730_s5 + $0x10] sm:$0xff]  ;;  %vm283_vm1 = vcmask 7168   ;;  %v220_v26 = vld [vmem:[%s730_s5 + $0x8] sm:$0xff] }
  0x3b   : > { %239 = vadd.xlane.f32.xlu1 %v736_v2  ;;  %v223_v18 = vld [vmem:[%s730_s5 + $0x20] sm:$0xff]  ;;  %v224_v27 = vld [vmem:[%s730_s5 + $0x28] sm:$0xff]  ;;  %v222_v28 = vld [vmem:[%s730_s5 + $0x18] sm:$0xff] }
  0x3c   : > { %p812_p4 = pnand %p300_p3, %p198_p0  ;;  %v225_v35 = vld [vmem:[%s730_s5 + $0x30] sm:$0xff]  ;;  %v227_v36 = vld [vmem:[%s730_s5 + $0x40] sm:$0xff]  ;;  %v226_v37 = vld [vmem:[%s730_s5 + $0x38] sm:$0xff] }
  0x3d   : > { %v228_v44 = vld [vmem:[%s730_s5 + $0x48] sm:$0xff]  ;;  %v230_v45 = vld [vmem:[%s730_s5 + $0x58] sm:$0xff]  ;;  %v229_v46 = vld [vmem:[%s730_s5 + $0x50] sm:$0xff] }
  0x3e   : > { %v231_v53 = vld [vmem:[%s730_s5 + $0x60] sm:$0xff]  ;;  %v232_v55 = vld [vmem:[%s730_s5 + $0x68] sm:$0xff] }
  0x3f   : > { %v233_v54 = vld [vmem:[%s730_s5 + $0x70] sm:$0xff] }
  0x40   : > { %v234_v62 = vld [vmem:[%s730_s5 + $0x78] sm:$0xff] }
  0x42   : > { %237 = vadd.xlane.f32.xlu0 %v734_v1  ;;  %245 = vadd.xlane.f32.xlu2 %v742_v5 }
  0x43   : > { %241 = vadd.xlane.f32.xlu1 %v738_v3 }
  0x4a   : > { %247 = vadd.xlane.f32.xlu0 %v744_v6  ;;  %251 = vadd.xlane.f32.xlu2 %v748_v8 }
  0x4b   : > { %249 = vadd.xlane.f32.xlu1 %v746_v7 }
  0x52   : > { %253 = vadd.xlane.f32.xlu0 %v750_v9  ;;  %257 = vadd.xlane.f32.xlu2 %v754_v11 }
  0x53   : > { %255 = vadd.xlane.f32.xlu1 %v752_v10 }
  0x5a   : > { %259 = vadd.xlane.f32.xlu0 %v756_v12  ;;  %263 = vadd.xlane.f32.xlu2 %v760_v14 }
  0x5b   : > { %261 = vadd.xlane.f32.xlu1 %v758_v13 }
  0x62   : > { %265 = vadd.xlane.f32.xlu0 %v762_v15 }
  0xad   : > { %v236_v20 = vpop.xlane.xlu0 %235  ;;  %v244_v21 = vpop.xlane.xlu2 %243 }
  0xae   : > { %v267_v22 = vadd.f32 %v236_v20, %v219_v17  ;;  %v271_v23 = vadd.f32 %v244_v21, %v223_v18  ;;  %v240_v24 = vpop.xlane.xlu1 %239 }
  0xaf   : > { %v269_v25 = vadd.f32 %v240_v24, %v221_v19 }
  0xb0   : > { %284 = vst.msk [vmem:[%s730_s5] sm:$0xff] %vm283_vm1, %v267_v22 }
  0xb1   : > { %288 = vst.msk [vmem:[%s730_s5 + $0x20] sm:$0xff] %vm283_vm1, %v271_v23 }
  0xb2   : > { %286 = vst.msk [vmem:[%s730_s5 + $0x10] sm:$0xff] %vm283_vm1, %v269_v25 }
  0xb5   : > { %v238_v29 = vpop.xlane.xlu0 %237  ;;  %v246_v30 = vpop.xlane.xlu2 %245 }
  0xb6   : > { %v268_v31 = vadd.f32 %v238_v29, %v220_v26  ;;  %v272_v32 = vadd.f32 %v246_v30, %v224_v27  ;;  %v242_v33 = vpop.xlane.xlu1 %241 }
  0xb7   : > { %v270_v34 = vadd.f32 %v242_v33, %v222_v28 }
  0xb8   : > { %285 = vst.msk [vmem:[%s730_s5 + $0x8] sm:$0xff] %vm283_vm1, %v268_v31 }
  0xb9   : > { %289 = vst.msk [vmem:[%s730_s5 + $0x28] sm:$0xff] %vm283_vm1, %v272_v32 }
  0xba   : > { %287 = vst.msk [vmem:[%s730_s5 + $0x18] sm:$0xff] %vm283_vm1, %v270_v34 }
  0xbd   : > { %v248_v38 = vpop.xlane.xlu0 %247  ;;  %v252_v39 = vpop.xlane.xlu2 %251 }
  0xbe   : > { %v273_v40 = vadd.f32 %v248_v38, %v225_v35  ;;  %v275_v41 = vadd.f32 %v252_v39, %v227_v36  ;;  %v250_v42 = vpop.xlane.xlu1 %249 }
  0xbf   : > { %v274_v43 = vadd.f32 %v250_v42, %v226_v37 }
  0xc0   : > { %290 = vst.msk [vmem:[%s730_s5 + $0x30] sm:$0xff] %vm283_vm1, %v273_v40 }
  0xc1   : > { %292 = vst.msk [vmem:[%s730_s5 + $0x40] sm:$0xff] %vm283_vm1, %v275_v41 }
  0xc2   : > { %291 = vst.msk [vmem:[%s730_s5 + $0x38] sm:$0xff] %vm283_vm1, %v274_v43 }
  0xc5   : > { %v254_v47 = vpop.xlane.xlu0 %253  ;;  %v258_v48 = vpop.xlane.xlu2 %257 }
  0xc6   : > { %v276_v49 = vadd.f32 %v254_v47, %v228_v44  ;;  %v278_v50 = vadd.f32 %v258_v48, %v230_v45  ;;  %v256_v51 = vpop.xlane.xlu1 %255 }
  0xc7   : > { %v277_v52 = vadd.f32 %v256_v51, %v229_v46 }
  0xc8   : > { %293 = vst.msk [vmem:[%s730_s5 + $0x48] sm:$0xff] %vm283_vm1, %v276_v49 }
  0xc9   : > { %295 = vst.msk [vmem:[%s730_s5 + $0x58] sm:$0xff] %vm283_vm1, %v278_v50 }
  0xca   : > { %294 = vst.msk [vmem:[%s730_s5 + $0x50] sm:$0xff] %vm283_vm1, %v277_v52 }
  0xcd   : > { %v260_v56 = vpop.xlane.xlu0 %259  ;;  %v264_v57 = vpop.xlane.xlu2 %263 }
  0xce   : > { %v279_v58 = vadd.f32 %v260_v56, %v231_v53  ;;  %v281_v59 = vadd.f32 %v264_v57, %v233_v54  ;;  %v262_v60 = vpop.xlane.xlu1 %261 }
  0xcf   : > { %v280_v61 = vadd.f32 %v262_v60, %v232_v55 }
  0xd0   : > { %296 = vst.msk [vmem:[%s730_s5 + $0x60] sm:$0xff] %vm283_vm1, %v279_v58 }
  0xd1   : > { %298 = vst.msk [vmem:[%s730_s5 + $0x70] sm:$0xff] %vm283_vm1, %v281_v59 }
  0xd2   : > { %297 = vst.msk [vmem:[%s730_s5 + $0x68] sm:$0xff] %vm283_vm1, %v280_v61 }
  0xd4   : > { %304 = sbr.rel (%p812_p4) target bundleno = 221 (0xdd), region = 36 }
  0xd5   : > { %v266_v63 = vpop.xlane.xlu0 %265 }
  0xd6   : > { %v282_v16 = vadd.f32 %v266_v63, %v234_v62 }
  0xd8   : > { %299 = vst.msk [vmem:[%s730_s5 + $0x78] sm:$0xff] %vm283_vm1, %v282_v16 }
  0xd9   : > { %v305_v17 = vlaneseq  ;;  %v625_v18 = vmov 0.0  }
  0xdb   : > { %vm307_vm2 = vcmp.lt.s32.totalorder %v305_v17, 256 }
  0xdc   : > { %309 = vst.msk [vmem:[%s919_s2] sm:$0x3] %vm307_vm2, %v625_v18 }
  0xdd PF: > { %v315_v19 = vadd.f32 %v734_v1, %v732_v0  ;;  %s443_s7 = sshll.u32 %s603_s12, 7 }
  0xde   : > { %s311_s8 = sshra.s32 %s443_s7, 7 }
  0xdf   : > { %v316_v20 = vadd.f32 %v315_v19, %v736_v2  ;;  %s313_s21 = scalar_lea.vmem %s919_s2, %s311_s8 }
  0xe1   : > { %v317_v21 = vadd.f32 %v316_v20, %v738_v3 }
  0xe3   : > { %v318_v22 = vadd.f32 %v317_v21, %v740_v4 }
  0xe5   : > { %v319_v23 = vadd.f32 %v318_v22, %v742_v5 }
  0xe7   : > { %v320_v24 = vadd.f32 %v319_v23, %v744_v6 }
  0xe9   : > { %v321_v25 = vadd.f32 %v320_v24, %v746_v7 }
  0xeb   : > { %v322_v26 = vadd.f32 %v321_v25, %v748_v8 }
  0xed   : > { %v323_v27 = vadd.f32 %v322_v26, %v750_v9  ;;  %v337_v9 = vlaneseq }
  0xef   : > { %v324_v28 = vadd.f32 %v323_v27, %v752_v10  ;;  %vm339_vm3 = vcmp.lt.s32.totalorder %v337_v9, 128 }
  0xf1   : > { %v325_v0 = vadd.f32 %v324_v28, %v754_v11  ;;  %v314_v11 = vld [vmem:[%s313_s21] sm:$0x1] }
  0xf3   : > { %v326_v1 = vadd.f32 %v325_v0, %v756_v12 }
  0xf5   : > { %v327_v2 = vadd.f32 %v326_v1, %v758_v13 }
  0xf7   : > { %v328_v3 = vadd.f32 %v327_v2, %v760_v14 }
  0xf9   : > { %v329_v4 = vadd.f32 %v328_v3, %v762_v15 }
  0xfb   : > { %v330_v5 = vrot.slane %v329_v4, 4 }
  0xfd   : > { %v331_v6 = vadd.f32 %v330_v5, %v329_v4 }
  0xff   : > { %v332_v7 = vrot.slane %v331_v6, 2 }
 0x101   : > { %v333_v8 = vadd.f32 %v332_v7, %v331_v6 }
 0x103   : > { %v334_v10 = vrot.slane %v333_v8, 1 }
 0x105   : > { %v335_v12 = vadd.f32 %v334_v10, %v333_v8 }
 0x107   : > { %v336_v13 = vadd.f32 %v335_v12, %v314_v11 }
 0x109   : > { %341 = vst.msk [vmem:[%s313_s21] sm:$0x1] %vm339_vm3, %v336_v13 }
 0x10a PF: > { %s16_s16 = sadd.s32 1, %s619_s16   ;;  %s923_s9 = smov %s595_s10 }
 0x10b   : > { %p13_p5 = scmp.ge.s32.totalorder %s16_s16, 6   ;;  %s924_s10 = smov %s599_s11 }
 0x10c   : > { %s925_s11 = smov %s708_s29  ;;  %s926_s12 = smov %s611_s14 }
 0x10d   : > { %s927_s13 = smov %s615_s15  ;;  %s928_s14 = smov %s931_s18 }
 0x10e   : > { %s929_s15 = smov %s935_s19  ;;  %15 = sbr.rel (!%p13_p5) target bundleno = 5 (0x5), region = 81 }
 0x113   :  { %370 = vsyncpa [#allocation3], 1 }
 0x114   :  { %372 = vsyncpa [#allocation3 + $0x1], 1 }

// kernel: self_expression2_forward.5
= control target key start
LH: loop header
LB: loop body
LE: loop exit
PB: predicated region body
PF: predicated region fallthrough
CT: control target
= control target key end

     0   :  { %s728_s9 = smov 0   ;;  %s730_s10 = smov 0   ;;  %s925_s0 = inlined_call_operand.vmem [shape: f32[256,256], index: 0, kind: input, shape index: {}]   ;;  %s926_s1 = inlined_call_operand.vmem [shape: f32[256,128], index: 1, kind: input, shape index: {}]   ;;  %s927_s2 = inlined_call_operand.vmem [shape: f32[256,128], index: 2, kind: output, shape index: {}]  }
   0x1   :  { %s732_s11 = smov 0   ;;  %s734_s12 = smov 0  }
   0x2   :  { %s736_s13 = smov 0   ;;  %s738_s14 = smov 0  }
   0x3   :  { %s740_s15 = smov 0  }
   0x4 LB: > { %s21_s16 = sadd.s32 1, %s702_s13  ;;  %s24_s17 = sadd.s32 1, %s706_s14  ;;  %s710_s15 = sphi %s740_s15, %s12_s15   ;;  %s706_s14 = sphi %s738_s14, %s933_s14   ;;  %s702_s13 = sphi %s736_s13, %s932_s13   ;;  %s698_s12 = sphi %s734_s12, %s931_s12   ;;  %s694_s11 = sphi %s732_s11, %s930_s11   ;;  %s690_s10 = sphi %s730_s10, %s929_s10   ;;  %s686_s9 = sphi %s728_s9, %s928_s9  }
   0x5   : > { %p22_p0 = scmp.ge.s32.totalorder %s21_s16, 2  ;;  %p40_p1 = scmp.ne.s32.totalorder %s690_s10, %s686_s9 }
   0x6   : > { %p41_p2 = scmp.eq.s32.totalorder %s710_s15, 0  ;;  %s33_s21 = sadd.s32 1, %s690_s10 }
   0x7   : > { %s935_s16 = smov (%p22_p0, %s21_s16), 0  ;;  %s937_s17 = smov (!%p22_p0, %s24_s17), %s706_s14 }
   0x8   : > { %p42_p3 = por %p41_p2, %p40_p1  ;;  %p26_p4 = scmp.ge.s32.totalorder %s937_s17, 2 }
   0x9   : > { %s29_s18 = ssub.s32 %s702_s13, %s935_s16  ;;  %p536_p6 = scmp.ge.s32.totalorder %s710_s15, 4 }
   0xa   : > { %s939_s17 = smov (%p26_p4, %s937_s17), 0 }
   0xb   : > { %s28_s19 = ssub.s32 %s706_s14, %s939_s17  ;;  %118 = sbr.rel (%p536_p6) target bundleno = 38 (0x26), region = 16 }
   0xc   : > { %s30_s20 = sor.u32 %s29_s18, %s28_s19 }
   0xd   : > { %p31_p5 = scmp.eq.s32.totalorder %s30_s20, 0 }
   0xf   : > { %s779_s22 = scalar_select %p31_p5, %s690_s10, %s33_s21  }
  0x10   : > { %121 = sbr.rel (!%p42_p3) target bundleno = 38 (0x26), region = 20  ;;  %s123_s23 = sand.u32 (%p42_p3), 1, %s690_s10  }
  0x11   : > { %s550_s24 = sshll.u32 (%p42_p3), %s706_s14, 5  ;;  %s537_s25 = sshll.u32 (%p42_p3), %s123_s23, 7 }
  0x12   : > { %s128_s26 = sadd.s32 (%p42_p3), %s702_s13, %s550_s24  ;;  %s125_s3 = scalar_lea.vmem (%p42_p3), [#allocation2], %s537_s25 }
  0x13   : > { %s540_s27 = sshll.u32 (%p42_p3), %s128_s26, 3 }
  0x14   : > { %s788_s30 = scalar_lea.vmem (%p42_p3), %s925_s0, %s540_s27 }
  0x15   : > { %v189_v0 = vld [vmem:[%s788_s30] sm:$0xff]  ;;  %v191_v1 = vld [vmem:[%s788_s30 + $0x10] sm:$0xff] }
  0x16   : > { %v193_v2 = vld [vmem:[%s788_s30 + $0x20] sm:$0xff]  ;;  %190 = vst [vmem:[%s125_s3] sm:$0xff] %v189_v0  ;;  %v195_v3 = vld [vmem:[%s788_s30 + $0x30] sm:$0xff] }
  0x17   : > { %192 = vst [vmem:[%s125_s3 + $0x8] sm:$0xff] %v191_v1  ;;  %v197_v4 = vld [vmem:[%s788_s30 + $0x40] sm:$0xff]  ;;  %v199_v5 = vld [vmem:[%s788_s30 + $0x50] sm:$0xff] }
  0x18   : > { %194 = vst [vmem:[%s125_s3 + $0x10] sm:$0xff] %v193_v2  ;;  %v201_v6 = vld [vmem:[%s788_s30 + $0x60] sm:$0xff]  ;;  %v203_v7 = vld [vmem:[%s788_s30 + $0x70] sm:$0xff] }
  0x19   : > { %196 = vst [vmem:[%s125_s3 + $0x18] sm:$0xff] %v195_v3  ;;  %v205_v8 = vld [vmem:[%s788_s30 + $0x80] sm:$0xff]  ;;  %v207_v9 = vld [vmem:[%s788_s30 + $0x90] sm:$0xff] }
  0x1a   : > { %198 = vst [vmem:[%s125_s3 + $0x20] sm:$0xff] %v197_v4  ;;  %v209_v10 = vld [vmem:[%s788_s30 + $0xa0] sm:$0xff]  ;;  %v211_v11 = vld [vmem:[%s788_s30 + $0xb0] sm:$0xff] }
  0x1b   : > { %200 = vst [vmem:[%s125_s3 + $0x28] sm:$0xff] %v199_v5  ;;  %v213_v12 = vld [vmem:[%s788_s30 + $0xc0] sm:$0xff]  ;;  %v215_v13 = vld [vmem:[%s788_s30 + $0xd0] sm:$0xff] }
  0x1c   : > { %202 = vst [vmem:[%s125_s3 + $0x30] sm:$0xff] %v201_v6  ;;  %v217_v14 = vld [vmem:[%s788_s30 + $0xe0] sm:$0xff]  ;;  %v219_v15 = vld [vmem:[%s788_s30 + $0xf0] sm:$0xff] }
  0x1d   : > { %204 = vst [vmem:[%s125_s3 + $0x38] sm:$0xff] %v203_v7 }
  0x1e   : > { %206 = vst [vmem:[%s125_s3 + $0x40] sm:$0xff] %v205_v8 }
  0x1f   : > { %208 = vst [vmem:[%s125_s3 + $0x48] sm:$0xff] %v207_v9 }
  0x20   : > { %210 = vst [vmem:[%s125_s3 + $0x50] sm:$0xff] %v209_v10 }
  0x21   : > { %212 = vst [vmem:[%s125_s3 + $0x58] sm:$0xff] %v211_v11 }
  0x22   : > { %214 = vst [vmem:[%s125_s3 + $0x60] sm:$0xff] %v213_v12 }
  0x23   : > { %216 = vst [vmem:[%s125_s3 + $0x68] sm:$0xff] %v215_v13 }
  0x24   : > { %218 = vst [vmem:[%s125_s3 + $0x70] sm:$0xff] %v217_v14 }
  0x25   : > { %220 = vst [vmem:[%s125_s3 + $0x78] sm:$0xff] %v219_v15 }
  0x26 PF: > { %p541_p7 = scmp.ge.s32.totalorder %s710_s15, 1  ;;  %p234_p8 = scmp.lt.s32.totalorder %s710_s15, 5 }
  0x28   : > { %p235_p9 = pnand %p541_p7, %p234_p8 }
  0x29   : > { %s241_s4 = sand.u32 (!%p235_p9), 1, %s686_s9   ;;  %s543_s5 = sshll.u32 (!%p235_p9), %s694_s11, 4 }
  0x2a   : > { %238 = sbr.rel (%p235_p9) target bundleno = 264 (0x108), region = 62  ;;  %s542_s6 = sshll.u32 (!%p235_p9), %s241_s4, 7 }
  0x2b   : > { %p269_p10 = scmp.lt.s32.totalorder (!%p235_p9), %s543_s5, 31  ;;  %s545_s7 = sshll.u32 (!%p235_p9), %s698_s12, 4 }
  0x2c   : > { %p275_p11 = scmp.lt.s32.totalorder (!%p235_p9), %s545_s7, 31  ;;  %s821_s9 = scalar_lea.vmem (!%p235_p9), [#allocation2], %s542_s6 }
  0x2d   : > { %p547_p12 = scmp.ne.s32.totalorder (!%p235_p9), %s694_s11, 0 }
  0x2f   : > { %s941_s5 = smov (!%p269_p10, %s543_s5), 31  ;;  %s943_s7 = smov (!%p275_p11, %s545_s7), 31 }
  0x30   : > { %s544_s8 = sshll.u32 %s941_s5, 3  ;;  %s546_s21 = sshll.u32 %s943_s7, 3 }
  0x31   : > { %s814_s20 = scalar_lea.vmem %s926_s1, %s544_s8  ;;  %s819_s25 = scalar_lea.vmem %s927_s2, %s546_s21 }
  0x32   : > { %283 = sbr.rel (%p547_p12) target bundleno = 72 (0x48), region = 70 }
  0x37   : > { %v712_v16 = vmov 0.0  }
  0x38   : > { %284 = vst [vmem:[%s819_s25] sm:$0xff] %v712_v16 }
  0x39   : > { %285 = vst [vmem:[%s819_s25 + $0x8] sm:$0xff] %v712_v16 }
  0x3a   : > { %286 = vst [vmem:[%s819_s25 + $0x10] sm:$0xff] %v712_v16 }
  0x3b   : > { %287 = vst [vmem:[%s819_s25 + $0x18] sm:$0xff] %v712_v16 }
  0x3c   : > { %288 = vst [vmem:[%s819_s25 + $0x20] sm:$0xff] %v712_v16 }
  0x3d   : > { %289 = vst [vmem:[%s819_s25 + $0x28] sm:$0xff] %v712_v16 }
  0x3e   : > { %290 = vst [vmem:[%s819_s25 + $0x30] sm:$0xff] %v712_v16 }
  0x3f   : > { %291 = vst [vmem:[%s819_s25 + $0x38] sm:$0xff] %v712_v16 }
  0x40   : > { %292 = vst [vmem:[%s819_s25 + $0x40] sm:$0xff] %v712_v16 }
  0x41   : > { %293 = vst [vmem:[%s819_s25 + $0x48] sm:$0xff] %v712_v16 }
  0x42   : > { %294 = vst [vmem:[%s819_s25 + $0x50] sm:$0xff] %v712_v16 }
  0x43   : > { %295 = vst [vmem:[%s819_s25 + $0x58] sm:$0xff] %v712_v16 }
  0x44   : > { %296 = vst [vmem:[%s819_s25 + $0x60] sm:$0xff] %v712_v16 }
  0x45   : > { %297 = vst [vmem:[%s819_s25 + $0x68] sm:$0xff] %v712_v16 }
  0x46   : > { %298 = vst [vmem:[%s819_s25 + $0x70] sm:$0xff] %v712_v16 }
  0x47   : > { %299 = vst [vmem:[%s819_s25 + $0x78] sm:$0xff] %v712_v16 }
  0x48 PF: > { %v315_v17 = vld [vmem:[%s814_s20 + $0x78] sm:$0xff]  ;;  %v314_v18 = vld [vmem:[%s814_s20 + $0x70] sm:$0xff]  ;;  %v313_v19 = vld [vmem:[%s814_s20 + $0x68] sm:$0xff] }
  0x49   : > { %552 = vmatpush.msra.mxu2 %v315_v17  ;;  %553 = vmatpush.msra.mxu3 %v315_v17  ;;  %v312_v20 = vld [vmem:[%s814_s20 + $0x60] sm:$0xff]  ;;  %v311_v21 = vld [vmem:[%s814_s20 + $0x58] sm:$0xff]  ;;  %v310_v22 = vld [vmem:[%s814_s20 + $0x50] sm:$0xff] }
  0x4a   : > { %348 = vmatpush.msra.mxu0 %v315_v17  ;;  %551 = vmatpush.msra.mxu1 %v315_v17  ;;  %v309_v23 = vld [vmem:[%s814_s20 + $0x48] sm:$0xff]  ;;  %v308_v24 = vld [vmem:[%s814_s20 + $0x40] sm:$0xff]  ;;  %v307_v25 = vld [vmem:[%s814_s20 + $0x38] sm:$0xff] }
  0x4b   : > { %555 = vmatpush.msra.mxu2 %v314_v18  ;;  %556 = vmatpush.msra.mxu3 %v314_v18  ;;  %v306_v26 = vld [vmem:[%s814_s20 + $0x30] sm:$0xff]  ;;  %v305_v27 = vld [vmem:[%s814_s20 + $0x28] sm:$0xff]  ;;  %v304_v28 = vld [vmem:[%s814_s20 + $0x20] sm:$0xff] }
  0x4c   : > { %349 = vmatpush.msra.mxu0 %v314_v18  ;;  %554 = vmatpush.msra.mxu1 %v314_v18  ;;  %v303_v29 = vld [vmem:[%s814_s20 + $0x18] sm:$0xff]  ;;  %v302_v30 = vld [vmem:[%s814_s20 + $0x10] sm:$0xff]  ;;  %v301_v31 = vld [vmem:[%s814_s20 + $0x8] sm:$0xff] }
  0x4d   : > { %558 = vmatpush.msra.mxu2 %v313_v19  ;;  %559 = vmatpush.msra.mxu3 %v313_v19  ;;  %v300_v32 = vld [vmem:[%s814_s20] sm:$0xff]  ;;  %v341_v37 = vld [vmem:[%s821_s9 + $0x48] sm:$0xff]  ;;  %v342_v41 = vld [vmem:[%s821_s9 + $0x50] sm:$0xff] }
  0x4e   : > { %350 = vmatpush.msra.mxu0 %v313_v19  ;;  %557 = vmatpush.msra.mxu1 %v313_v19  ;;  %v340_v33 = vld [vmem:[%s821_s9 + $0x40] sm:$0xff]  ;;  %v345_v38 = vld [vmem:[%s821_s9 + $0x68] sm:$0xff]  ;;  %v346_v42 = vld [vmem:[%s821_s9 + $0x70] sm:$0xff] }
  0x4f   : > { %561 = vmatpush.msra.mxu2 %v312_v20  ;;  %562 = vmatpush.msra.mxu3 %v312_v20  ;;  %v344_v34 = vld [vmem:[%s821_s9 + $0x60] sm:$0xff]  ;;  %v333_v39 = vld [vmem:[%s821_s9 + $0x8] sm:$0xff]  ;;  %v334_v43 = vld [vmem:[%s821_s9 + $0x10] sm:$0xff] }
  0x50   : > { %351 = vmatpush.msra.mxu0 %v312_v20  ;;  %560 = vmatpush.msra.mxu1 %v312_v20  ;;  %v332_v35 = vld [vmem:[%s821_s9] sm:$0xff]  ;;  %v337_v40 = vld [vmem:[%s821_s9 + $0x28] sm:$0xff]  ;;  %v338_v44 = vld [vmem:[%s821_s9 + $0x30] sm:$0xff] }
  0x51   : > { %564 = vmatpush.msra.mxu2 %v311_v21  ;;  %565 = vmatpush.msra.mxu3 %v311_v21  ;;  %v336_v36 = vld [vmem:[%s821_s9 + $0x20] sm:$0xff]  ;;  %v343_v45 = vld [vmem:[%s821_s9 + $0x58] sm:$0xff]  ;;  %v317_v61 = vld [vmem:[%s819_s25 + $0x8] sm:$0xff] }
  0x52   : > { %352 = vmatpush.msra.mxu0 %v311_v21  ;;  %563 = vmatpush.msra.mxu1 %v311_v21  ;;  %v347_v46 = vld [vmem:[%s821_s9 + $0x78] sm:$0xff]  ;;  %v316_v49 = vld [vmem:[%s819_s25] sm:$0xff]  ;;  %v321_v62 = vld [vmem:[%s819_s25 + $0x28] sm:$0xff] }
  0x53   : > { %567 = vmatpush.msra.mxu2 %v310_v22  ;;  %568 = vmatpush.msra.mxu3 %v310_v22  ;;  %v335_v47 = vld [vmem:[%s821_s9 + $0x18] sm:$0xff]  ;;  %v320_v50 = vld [vmem:[%s819_s25 + $0x20] sm:$0xff]  ;;  %v325_v3 = vld [vmem:[%s819_s25 + $0x48] sm:$0xff] }
  0x54   : > { %353 = vmatpush.msra.mxu0 %v310_v22  ;;  %566 = vmatpush.msra.mxu1 %v310_v22  ;;  %v339_v48 = vld [vmem:[%s821_s9 + $0x38] sm:$0xff]  ;;  %v324_v55 = vld [vmem:[%s819_s25 + $0x40] sm:$0xff]  ;;  %v329_v4 = vld [vmem:[%s819_s25 + $0x68] sm:$0xff] }
  0x55   : > { %570 = vmatpush.msra.mxu2 %v309_v23  ;;  %571 = vmatpush.msra.mxu3 %v309_v23  ;;  %v328_v56 = vld [vmem:[%s819_s25 + $0x60] sm:$0xff]  ;;  %v318_v9 = vld [vmem:[%s819_s25 + $0x10] sm:$0xff]  ;;  %v319_v21 = vld [vmem:[%s819_s25 + $0x18] sm:$0xff] }
  0x56   : > { %354 = vmatpush.msra.mxu0 %v309_v23  ;;  %569 = vmatpush.msra.mxu1 %v309_v23  ;;  %v322_v10 = vld [vmem:[%s819_s25 + $0x30] sm:$0xff]  ;;  %v323_v22 = vld [vmem:[%s819_s25 + $0x38] sm:$0xff] }
  0x57   : > { %573 = vmatpush.msra.mxu2 %v308_v24  ;;  %574 = vmatpush.msra.mxu3 %v308_v24  ;;  %v326_v15 = vld [vmem:[%s819_s25 + $0x50] sm:$0xff] }
  0x58   : > { %355 = vmatpush.msra.mxu0 %v308_v24  ;;  %572 = vmatpush.msra.mxu1 %v308_v24  ;;  %v330_v16 = vld [vmem:[%s819_s25 + $0x70] sm:$0xff] }
  0x59   : > { %576 = vmatpush.msra.mxu2 %v307_v25  ;;  %577 = vmatpush.msra.mxu3 %v307_v25 }
  0x5a   : > { %356 = vmatpush.msra.mxu0 %v307_v25  ;;  %575 = vmatpush.msra.mxu1 %v307_v25 }
  0x5b   : > { %579 = vmatpush.msra.mxu2 %v306_v26  ;;  %580 = vmatpush.msra.mxu3 %v306_v26 }
  0x5c   : > { %357 = vmatpush.msra.mxu0 %v306_v26  ;;  %578 = vmatpush.msra.mxu1 %v306_v26 }
  0x5d   : > { %582 = vmatpush.msra.mxu2 %v305_v27  ;;  %583 = vmatpush.msra.mxu3 %v305_v27 }
  0x5e   : > { %358 = vmatpush.msra.mxu0 %v305_v27  ;;  %581 = vmatpush.msra.mxu1 %v305_v27  ;;  %v327_v27 = vld [vmem:[%s819_s25 + $0x58] sm:$0xff] }
  0x5f   : > { %585 = vmatpush.msra.mxu2 %v304_v28  ;;  %586 = vmatpush.msra.mxu3 %v304_v28 }
  0x60   : > { %359 = vmatpush.msra.mxu0 %v304_v28  ;;  %584 = vmatpush.msra.mxu1 %v304_v28  ;;  %v331_v28 = vld [vmem:[%s819_s25 + $0x78] sm:$0xff] }
  0x61   : > { %588 = vmatpush.msra.mxu2 %v303_v29  ;;  %589 = vmatpush.msra.mxu3 %v303_v29 }
  0x62   : > { %360 = vmatpush.msra.mxu0 %v303_v29  ;;  %587 = vmatpush.msra.mxu1 %v303_v29 }
  0x63   : > { %591 = vmatpush.msra.mxu2 %v302_v30  ;;  %592 = vmatpush.msra.mxu3 %v302_v30 }
  0x64   : > { %361 = vmatpush.msra.mxu0 %v302_v30  ;;  %590 = vmatpush.msra.mxu1 %v302_v30 }
  0x65   : > { %594 = vmatpush.msra.mxu2 %v301_v31  ;;  %595 = vmatpush.msra.mxu3 %v301_v31 }
  0x66   : > { %362 = vmatpush.msra.mxu0 %v301_v31  ;;  %593 = vmatpush.msra.mxu1 %v301_v31 }
  0x67   : > { %597 = vmatpush.msra.mxu2 %v300_v32  ;;  %598 = vmatpush.msra.mxu3 %v300_v32 }
  0x68   : > { %388 = vmatmul.f32.vlgmr.msra.gmra.mxu2 %v340_v33  ;;  %400 = vmatmul.f32.vlgmr.msra.gmra.mxu3 %v344_v34 }
  0x69   : > { %363 = vmatpush.msra.mxu0 %v300_v32  ;;  %596 = vmatpush.msra.mxu1 %v300_v32 }
  0x6a   : > { %364 = vmatmul.f32.vlgmr.msra.gmra.mxu0 %v332_v35  ;;  %376 = vmatmul.f32.vlgmr.msra.gmra.mxu1 %v336_v36 }
  0x70   : > { %391 = vmatmul.f32.gmra.mxu2 %v341_v37  ;;  %403 = vmatmul.f32.gmra.mxu3 %v345_v38 }
  0x72   : > { %367 = vmatmul.f32.gmra.mxu0 %v333_v39  ;;  %379 = vmatmul.f32.gmra.mxu1 %v337_v40 }
  0x78   : > { %394 = vmatmul.f32.gmra.mxu2 %v342_v41  ;;  %406 = vmatmul.f32.gmra.mxu3 %v346_v42 }
  0x7a   : > { %370 = vmatmul.f32.gmra.mxu0 %v334_v43  ;;  %382 = vmatmul.f32.gmra.mxu1 %v338_v44 }
  0x80   : > { %397 = vmatmul.f32.gmra.mxu2 %v343_v45  ;;  %409 = vmatmul.f32.gmra.mxu3 %v347_v46 }
  0x82   : > { %373 = vmatmul.f32.gmra.mxu0 %v335_v47  ;;  %385 = vmatmul.f32.gmra.mxu1 %v339_v48 }
  0xe7   : > { %v365_v51 = vpop.f32.mrf.mxu0  ;;  %v377_v52 = vpop.f32.mrf.mxu1 }
  0xe8   : > { %v413_v53 = vadd.f32 %v365_v51, %v316_v49  ;;  %v417_v54 = vadd.f32 %v377_v52, %v320_v50 }
  0xea   : > { %429 = vst [vmem:[%s819_s25] sm:$0xff] %v413_v53 }
  0xeb   : > { %433 = vst [vmem:[%s819_s25 + $0x20] sm:$0xff] %v417_v54  ;;  %v389_v57 = vpop.f32.mrf.mxu2  ;;  %v401_v58 = vpop.f32.mrf.mxu3 }
  0xec   : > { %v421_v59 = vadd.f32 %v389_v57, %v324_v55  ;;  %v425_v60 = vadd.f32 %v401_v58, %v328_v56 }
  0xee   : > { %437 = vst [vmem:[%s819_s25 + $0x40] sm:$0xff] %v421_v59 }
  0xef   : > { %441 = vst [vmem:[%s819_s25 + $0x60] sm:$0xff] %v425_v60  ;;  %v368_v63 = vpop.f32.mrf.mxu0  ;;  %v380_v0 = vpop.f32.mrf.mxu1 }
  0xf0   : > { %v414_v1 = vadd.f32 %v368_v63, %v317_v61  ;;  %v418_v2 = vadd.f32 %v380_v0, %v321_v62 }
  0xf2   : > { %430 = vst [vmem:[%s819_s25 + $0x8] sm:$0xff] %v414_v1 }
  0xf3   : > { %434 = vst [vmem:[%s819_s25 + $0x28] sm:$0xff] %v418_v2  ;;  %v392_v5 = vpop.f32.mrf.mxu2  ;;  %v404_v6 = vpop.f32.mrf.mxu3 }
  0xf4   : > { %v422_v7 = vadd.f32 %v392_v5, %v325_v3  ;;  %v426_v8 = vadd.f32 %v404_v6, %v329_v4 }
  0xf6   : > { %438 = vst [vmem:[%s819_s25 + $0x48] sm:$0xff] %v422_v7 }
  0xf7   : > { %442 = vst [vmem:[%s819_s25 + $0x68] sm:$0xff] %v426_v8  ;;  %v371_v11 = vpop.f32.mrf.mxu0  ;;  %v383_v12 = vpop.f32.mrf.mxu1 }
  0xf8   : > { %v415_v13 = vadd.f32 %v371_v11, %v318_v9  ;;  %v419_v14 = vadd.f32 %v383_v12, %v322_v10 }
  0xfa   : > { %431 = vst [vmem:[%s819_s25 + $0x10] sm:$0xff] %v415_v13 }
  0xfb   : > { %435 = vst [vmem:[%s819_s25 + $0x30] sm:$0xff] %v419_v14  ;;  %v395_v17 = vpop.f32.mrf.mxu2  ;;  %v407_v18 = vpop.f32.mrf.mxu3 }
  0xfc   : > { %v423_v19 = vadd.f32 %v395_v17, %v326_v15  ;;  %v427_v20 = vadd.f32 %v407_v18, %v330_v16 }
  0xfe   : > { %439 = vst [vmem:[%s819_s25 + $0x50] sm:$0xff] %v423_v19 }
  0xff   : > { %443 = vst [vmem:[%s819_s25 + $0x70] sm:$0xff] %v427_v20  ;;  %v374_v23 = vpop.f32.mrf.mxu0  ;;  %v386_v24 = vpop.f32.mrf.mxu1 }
 0x100   : > { %v416_v25 = vadd.f32 %v374_v23, %v319_v21  ;;  %v420_v26 = vadd.f32 %v386_v24, %v323_v22 }
 0x102   : > { %432 = vst [vmem:[%s819_s25 + $0x18] sm:$0xff] %v416_v25 }
 0x103   : > { %436 = vst [vmem:[%s819_s25 + $0x38] sm:$0xff] %v420_v26  ;;  %v398_v29 = vpop.f32.mrf.mxu2  ;;  %v410_v30 = vpop.f32.mrf.mxu3 }
 0x104   : > { %v424_v31 = vadd.f32 %v398_v29, %v327_v27  ;;  %v428_v32 = vadd.f32 %v410_v30, %v331_v28 }
 0x106   : > { %440 = vst [vmem:[%s819_s25 + $0x58] sm:$0xff] %v424_v31 }
 0x107   : > { %444 = vst [vmem:[%s819_s25 + $0x78] sm:$0xff] %v428_v32 }
 0x108 PF: > { %s12_s15 = sadd.s32 1, %s710_s15   ;;  %s928_s9 = smov %s690_s10 }
 0x109   : > { %p9_p13 = scmp.ge.s32.totalorder %s12_s15, 6   ;;  %s929_s10 = smov %s779_s22 }
 0x10a   : > { %s930_s11 = smov %s702_s13  ;;  %s931_s12 = smov %s706_s14 }
 0x10b   : > { %s932_s13 = smov %s935_s16  ;;  %s933_s14 = smov %s939_s17 }
 0x10c   :  { %11 = sbr.rel (!%p9_p13) target bundleno = 4 (0x4), region = 108 }

// kernel: self_expression2_forward.4
= control target key start
LH: loop header
LB: loop body
LE: loop exit
PB: predicated region body
PF: predicated region fallthrough
CT: control target
= control target key end

     0   :  { %s2006_s0 = inlined_call_operand.vmem [shape: f32[256,256], index: 0, kind: input, shape index: {}, may-alias: {0,1}]   ;;  %s2007_s1 = inlined_call_operand.vmem [shape: f32[256,256], index: 1, kind: input, shape index: {}, may-alias: {0,1}]   ;;  %s2008_s2 = inlined_call_operand.vmem [shape: f32[256,128], index: 2, kind: input, shape index: {}, may-alias: {2,3}]   ;;  %s2009_s3 = inlined_call_operand.vmem [shape: f32[256,128], index: 3, kind: input, shape index: {}, may-alias: {2,3}]   ;;  %s2010_s4 = inlined_call_operand.vmem [shape: f32[256,1], index: 4, kind: input, shape index: {}, may-alias: {4,5}]   ;;  %s2011_s5 = inlined_call_operand.vmem [shape: f32[256,1], index: 5, kind: input, shape index: {}, may-alias: {4,5}]   ;;  %s2012_s6 = inlined_call_operand.vmem [shape: f32[256,128], index: 6, kind: output, shape index: {}]  }
   0x1   :  { %2013 = sst [smem:[#allocation4_spill]] %s2006_s0 }
   0x2   :  { %s1639_s21 = smov 0   ;;  %s1641_s22 = smov 0  }
   0x3   :  { %s1643_s23 = smov 0   ;;  %s1645_s24 = smov 0  }
   0x4   :  { %s1647_s25 = smov 0   ;;  %s1649_s26 = smov 0  }
   0x5   :  { %s1651_s27 = smov 0  }
   0x6 LB: > { %s25_s28 = sadd.s32 1, %s1591_s25  ;;  %s28_s29 = sadd.s32 1, %s1595_s26  ;;  %s1599_s27 = sphi %s1651_s27, %s16_s27   ;;  %s1595_s26 = sphi %s1649_s26, %s2021_s26   ;;  %s1591_s25 = sphi %s1647_s25, %s2020_s25   ;;  %s1587_s24 = sphi %s1645_s24, %s2019_s24   ;;  %s1583_s23 = sphi %s1643_s23, %s2018_s23   ;;  %s1579_s22 = sphi %s1641_s22, %s2017_s22   ;;  %s1575_s21 = sphi %s1639_s21, %s2016_s21  }
   0x7   : > { %p26_p0 = scmp.ge.s32.totalorder %s25_s28, 2  ;;  %p44_p1 = scmp.ne.s32.totalorder %s1579_s22, %s1575_s21 }
   0x8   : > { %p45_p2 = scmp.eq.s32.totalorder %s1599_s27, 0  ;;  %s37_s10 = sadd.s32 1, %s1579_s22 }
   0x9   : > { %s2023_s28 = smov (%p26_p0, %s25_s28), 0  ;;  %s2025_s29 = smov (!%p26_p0, %s28_s29), %s1595_s26 }
   0xa   : > { %p1682_p3 = por %p45_p2, %p44_p1  ;;  %p30_p4 = scmp.ge.s32.totalorder %s2025_s29, 2 }
   0xb   : > { %s33_s7 = ssub.s32 %s1591_s25, %s2023_s28  ;;  %p1420_p6 = scmp.ge.s32.totalorder %s1599_s27, 4 }
   0xc   : > { %s2027_s29 = smov (%p30_p4, %s2025_s29), 0 }
   0xd   : > { %s32_s8 = ssub.s32 %s1595_s26, %s2027_s29  ;;  %228 = sbr.rel (%p1420_p6) target bundleno = 66 (0x42), region = 16 }
   0xe   : > { %s34_s9 = sor.u32 %s33_s7, %s32_s8 }
   0xf   : > { %p35_p5 = scmp.eq.s32.totalorder %s34_s9, 0 }
  0x11   : > { %s1694_s11 = scalar_select %p35_p5, %s1579_s22, %s37_s10  }
  0x12   : > { %231 = sbr.rel (!%p1682_p3) target bundleno = 44 (0x2c), region = 20  ;;  %s233_s12 = sand.u32 (%p1682_p3), 1, %s1579_s22  }
  0x13   : > { %s1446_s13 = sshll.u32 (%p1682_p3), %s1595_s26, 5  ;;  %s1421_s14 = sshll.u32 (%p1682_p3), %s233_s12, 7 }
  0x14   : > { %s238_s15 = sadd.s32 (%p1682_p3), %s1591_s25, %s1446_s13  ;;  %s2015_s0 = sld [smem:[#allocation4_spill]] (%p1682_p3) }
  0x15   : > { %s1424_s16 = sshll.u32 (%p1682_p3), %s238_s15, 3  ;;  %s235_s20 = scalar_lea.vmem (%p1682_p3), [#allocation2], %s1421_s14 }
  0x1a   : > { %s1705_s19 = scalar_lea.vmem %s2015_s0, %s1424_s16 }
  0x1b   : > { %v299_v0 = vld [vmem:[%s1705_s19] sm:$0xff]  ;;  %v301_v1 = vld [vmem:[%s1705_s19 + $0x10] sm:$0xff] }
  0x1c   : > { %v303_v2 = vld [vmem:[%s1705_s19 + $0x20] sm:$0xff]  ;;  %300 = vst [vmem:[%s235_s20] sm:$0xff] %v299_v0  ;;  %v305_v3 = vld [vmem:[%s1705_s19 + $0x30] sm:$0xff] }
  0x1d   : > { %302 = vst [vmem:[%s235_s20 + $0x8] sm:$0xff] %v301_v1  ;;  %v307_v4 = vld [vmem:[%s1705_s19 + $0x40] sm:$0xff]  ;;  %v309_v5 = vld [vmem:[%s1705_s19 + $0x50] sm:$0xff] }
  0x1e   : > { %304 = vst [vmem:[%s235_s20 + $0x10] sm:$0xff] %v303_v2  ;;  %v311_v6 = vld [vmem:[%s1705_s19 + $0x60] sm:$0xff]  ;;  %v313_v7 = vld [vmem:[%s1705_s19 + $0x70] sm:$0xff] }
  0x1f   : > { %306 = vst [vmem:[%s235_s20 + $0x18] sm:$0xff] %v305_v3  ;;  %v315_v8 = vld [vmem:[%s1705_s19 + $0x80] sm:$0xff]  ;;  %v317_v9 = vld [vmem:[%s1705_s19 + $0x90] sm:$0xff] }
  0x20   : > { %308 = vst [vmem:[%s235_s20 + $0x20] sm:$0xff] %v307_v4  ;;  %v319_v10 = vld [vmem:[%s1705_s19 + $0xa0] sm:$0xff]  ;;  %v321_v11 = vld [vmem:[%s1705_s19 + $0xb0] sm:$0xff] }
  0x21   : > { %310 = vst [vmem:[%s235_s20 + $0x28] sm:$0xff] %v309_v5  ;;  %v323_v12 = vld [vmem:[%s1705_s19 + $0xc0] sm:$0xff]  ;;  %v325_v13 = vld [vmem:[%s1705_s19 + $0xd0] sm:$0xff] }
  0x22   : > { %312 = vst [vmem:[%s235_s20 + $0x30] sm:$0xff] %v311_v6  ;;  %v327_v14 = vld [vmem:[%s1705_s19 + $0xe0] sm:$0xff]  ;;  %v329_v15 = vld [vmem:[%s1705_s19 + $0xf0] sm:$0xff] }
  0x23   : > { %314 = vst [vmem:[%s235_s20 + $0x38] sm:$0xff] %v313_v7 }
  0x24   : > { %316 = vst [vmem:[%s235_s20 + $0x40] sm:$0xff] %v315_v8 }
  0x25   : > { %318 = vst [vmem:[%s235_s20 + $0x48] sm:$0xff] %v317_v9 }
  0x26   : > { %320 = vst [vmem:[%s235_s20 + $0x50] sm:$0xff] %v319_v10 }
  0x27   : > { %322 = vst [vmem:[%s235_s20 + $0x58] sm:$0xff] %v321_v11 }
  0x28   : > { %324 = vst [vmem:[%s235_s20 + $0x60] sm:$0xff] %v323_v12 }
  0x29   : > { %326 = vst [vmem:[%s235_s20 + $0x68] sm:$0xff] %v325_v13 }
  0x2a   : > { %328 = vst [vmem:[%s235_s20 + $0x70] sm:$0xff] %v327_v14 }
  0x2b   : > { %330 = vst [vmem:[%s235_s20 + $0x78] sm:$0xff] %v329_v15 }
  0x2c PF: > { %336 = sbr.rel (!%p1682_p3) target bundleno = 66 (0x42), region = 58  ;;  %s338_s7 = sand.u32 (%p1682_p3), 1, %s1579_s22  }
  0x2d   : > { %s1447_s8 = sshll.u32 (%p1682_p3), %s1591_s25, 5  ;;  %s1425_s9 = sshll.u32 (%p1682_p3), %s338_s7, 7 }
  0x2e   : > { %s343_s10 = sadd.s32 (%p1682_p3), %s1595_s26, %s1447_s8  ;;  %s340_s30 = scalar_lea.vmem (%p1682_p3), [#allocation3], %s1425_s9 }
  0x2f   : > { %s1428_s12 = sshll.u32 (%p1682_p3), %s343_s10, 3 }
  0x30   : > { %s1731_s15 = scalar_lea.vmem (%p1682_p3), %s2007_s1, %s1428_s12 }
  0x31   : > { %v404_v16 = vld [vmem:[%s1731_s15] sm:$0xff]  ;;  %v406_v17 = vld [vmem:[%s1731_s15 + $0x10] sm:$0xff] }
  0x32   : > { %v408_v18 = vld [vmem:[%s1731_s15 + $0x20] sm:$0xff]  ;;  %405 = vst [vmem:[%s340_s30] sm:$0xff] %v404_v16  ;;  %v410_v19 = vld [vmem:[%s1731_s15 + $0x30] sm:$0xff] }
  0x33   : > { %407 = vst [vmem:[%s340_s30 + $0x8] sm:$0xff] %v406_v17  ;;  %v412_v20 = vld [vmem:[%s1731_s15 + $0x40] sm:$0xff]  ;;  %v414_v21 = vld [vmem:[%s1731_s15 + $0x50] sm:$0xff] }
  0x34   : > { %409 = vst [vmem:[%s340_s30 + $0x10] sm:$0xff] %v408_v18  ;;  %v416_v22 = vld [vmem:[%s1731_s15 + $0x60] sm:$0xff]  ;;  %v418_v23 = vld [vmem:[%s1731_s15 + $0x70] sm:$0xff] }
  0x35   : > { %411 = vst [vmem:[%s340_s30 + $0x18] sm:$0xff] %v410_v19  ;;  %v420_v24 = vld [vmem:[%s1731_s15 + $0x80] sm:$0xff]  ;;  %v422_v25 = vld [vmem:[%s1731_s15 + $0x90] sm:$0xff] }
  0x36   : > { %413 = vst [vmem:[%s340_s30 + $0x20] sm:$0xff] %v412_v20  ;;  %v424_v26 = vld [vmem:[%s1731_s15 + $0xa0] sm:$0xff]  ;;  %v426_v27 = vld [vmem:[%s1731_s15 + $0xb0] sm:$0xff] }
  0x37   : > { %415 = vst [vmem:[%s340_s30 + $0x28] sm:$0xff] %v414_v21  ;;  %v428_v28 = vld [vmem:[%s1731_s15 + $0xc0] sm:$0xff]  ;;  %v430_v29 = vld [vmem:[%s1731_s15 + $0xd0] sm:$0xff] }
  0x38   : > { %417 = vst [vmem:[%s340_s30 + $0x30] sm:$0xff] %v416_v22  ;;  %v432_v30 = vld [vmem:[%s1731_s15 + $0xe0] sm:$0xff]  ;;  %v434_v31 = vld [vmem:[%s1731_s15 + $0xf0] sm:$0xff] }
  0x39   : > { %419 = vst [vmem:[%s340_s30 + $0x38] sm:$0xff] %v418_v23 }
  0x3a   : > { %421 = vst [vmem:[%s340_s30 + $0x40] sm:$0xff] %v420_v24 }
  0x3b   : > { %423 = vst [vmem:[%s340_s30 + $0x48] sm:$0xff] %v422_v25 }
  0x3c   : > { %425 = vst [vmem:[%s340_s30 + $0x50] sm:$0xff] %v424_v26 }
  0x3d   : > { %427 = vst [vmem:[%s340_s30 + $0x58] sm:$0xff] %v426_v27 }
  0x3e   : > { %429 = vst [vmem:[%s340_s30 + $0x60] sm:$0xff] %v428_v28 }
  0x3f   : > { %431 = vst [vmem:[%s340_s30 + $0x68] sm:$0xff] %v430_v29 }
  0x40   : > { %433 = vst [vmem:[%s340_s30 + $0x70] sm:$0xff] %v432_v30 }
  0x41   : > { %435 = vst [vmem:[%s340_s30 + $0x78] sm:$0xff] %v434_v31 }
  0x42 PF: > { %p1429_p7 = scmp.ge.s32.totalorder %s1599_s27, 1  ;;  %p476_p8 = scmp.lt.s32.totalorder %s1599_s27, 5 }
  0x44   : > { %p477_p9 = pnand %p1429_p7, %p476_p8 }
  0x45   : > { %s483_s16 = sand.u32 (!%p477_p9), 1, %s1575_s21   ;;  %s1432_s17 = sshll.u32 (!%p477_p9), %s1583_s23, 4 }
  0x46   : > { %480 = sbr.rel (%p477_p9) target bundleno = 820 (0x334), region = 112  ;;  %s1430_s18 = sshll.u32 (!%p477_p9), %s483_s16, 7 }
  0x47   : > { %p546_p10 = scmp.lt.s32.totalorder (!%p477_p9), %s1432_s17, 31  ;;  %s1434_s19 = sshll.u32 (!%p477_p9), %s1587_s24, 4 }
  0x48   : > { %p552_p11 = scmp.lt.s32.totalorder (!%p477_p9), %s1434_s19, 31  ;;  %s1779_s10 = scalar_lea.vmem (!%p477_p9), [#allocation2], %s1430_s18 }
  0x49   : > { %p1442_p12 = scmp.ne.s32.totalorder (!%p477_p9), %s1583_s23, 0 }
  0x4b   : > { %s2029_s17 = smov (!%p546_p10, %s1432_s17), 31  ;;  %s2031_s19 = smov (!%p552_p11, %s1434_s19), 31 }
  0x4c   : > { %s1433_s20 = sshll.u32 %s2029_s17, 3  ;;  %s1435_s14 = sshll.u32 %s2031_s19, 3 }
  0x4d   : > { %s1757_s9 = scalar_lea.vmem %s2008_s2, %s1433_s20  ;;  %s1762_s13 = scalar_lea.vmem %s2010_s4, %s1433_s20 }
  0x4e   : > { %s1767_s30 = scalar_lea.vmem %s2009_s3, %s1435_s14  ;;  %s1772_s17 = scalar_lea.vmem %s2011_s5, %s1435_s14 }
  0x4f   : > { %s1777_s0 = scalar_lea.vmem %s2012_s6, %s1435_s14  ;;  %s1781_s20 = scalar_lea.vmem [#allocation3], %s1430_s18 }
  0x50   : > { %578 = sbr.rel (%p1442_p12) target bundleno = 102 (0x66), region = 124 }
  0x55   : > { %v1601_v32 = vmov 0.0  }
  0x56   : > { %579 = vst [vmem:[%s1777_s0] sm:$0xff] %v1601_v32 }
  0x57   : > { %580 = vst [vmem:[%s1777_s0 + $0x8] sm:$0xff] %v1601_v32 }
  0x58   : > { %581 = vst [vmem:[%s1777_s0 + $0x10] sm:$0xff] %v1601_v32 }
  0x59   : > { %582 = vst [vmem:[%s1777_s0 + $0x18] sm:$0xff] %v1601_v32 }
  0x5a   : > { %583 = vst [vmem:[%s1777_s0 + $0x20] sm:$0xff] %v1601_v32 }
  0x5b   : > { %584 = vst [vmem:[%s1777_s0 + $0x28] sm:$0xff] %v1601_v32 }
  0x5c   : > { %585 = vst [vmem:[%s1777_s0 + $0x30] sm:$0xff] %v1601_v32 }
  0x5d   : > { %586 = vst [vmem:[%s1777_s0 + $0x38] sm:$0xff] %v1601_v32 }
  0x5e   : > { %587 = vst [vmem:[%s1777_s0 + $0x40] sm:$0xff] %v1601_v32 }
  0x5f   : > { %588 = vst [vmem:[%s1777_s0 + $0x48] sm:$0xff] %v1601_v32 }
  0x60   : > { %589 = vst [vmem:[%s1777_s0 + $0x50] sm:$0xff] %v1601_v32 }
  0x61   : > { %590 = vst [vmem:[%s1777_s0 + $0x58] sm:$0xff] %v1601_v32 }
  0x62   : > { %591 = vst [vmem:[%s1777_s0 + $0x60] sm:$0xff] %v1601_v32 }
  0x63   : > { %592 = vst [vmem:[%s1777_s0 + $0x68] sm:$0xff] %v1601_v32 }
  0x64   : > { %593 = vst [vmem:[%s1777_s0 + $0x70] sm:$0xff] %v1601_v32 }
  0x65   : > { %594 = vst [vmem:[%s1777_s0 + $0x78] sm:$0xff] %v1601_v32 }
  0x66 PF: > { %v610_v33 = vld [vmem:[%s1762_s13 + $0x78] sm:$0xff]  ;;  %v608_v34 = vld [vmem:[%s1762_s13 + $0x68] sm:$0xff]  ;;  %v1602_v35 = vmov 0   ;;  %v609_v37 = vld [vmem:[%s1762_s13 + $0x70] sm:$0xff]  ;;  %p1443_p13 = scmp.ne.s32.totalorder %s1583_s23, 1 }
  0x67   : > { %1540 = vset.pattern.permute.xlu1 %v1602_v35  ;;  %1539 = vset.pattern.permute.xlu0 %v1602_v35  ;;  %v606_v36 = vld [vmem:[%s1762_s13 + $0x58] sm:$0xff]  ;;  %v607_v38 = vld [vmem:[%s1762_s13 + $0x60] sm:$0xff]  ;;  %v605_v39 = vld [vmem:[%s1762_s13 + $0x50] sm:$0xff] }
  0x68   : > { %704 = vperm.xlu0 %1539, %v610_v33   ;;  %694 = vperm.xlu1 %1540, %v608_v34   ;;  %v604_v40 = vld [vmem:[%s1762_s13 + $0x48] sm:$0xff]  ;;  %v603_v41 = vld [vmem:[%s1762_s13 + $0x40] sm:$0xff]  ;;  %v602_v42 = vld [vmem:[%s1762_s13 + $0x38] sm:$0xff] }
  0x69   : > { %1541 = vset.pattern.permute.xlu2 %v1602_v35  ;;  %v601_v43 = vld [vmem:[%s1762_s13 + $0x30] sm:$0xff]  ;;  %v600_v44 = vld [vmem:[%s1762_s13 + $0x28] sm:$0xff]  ;;  %v599_v45 = vld [vmem:[%s1762_s13 + $0x20] sm:$0xff] }
  0x6a   : > { %684 = vperm.xlu2 %1541, %v606_v36   ;;  %v598_v46 = vld [vmem:[%s1762_s13 + $0x18] sm:$0xff]  ;;  %v597_v47 = vld [vmem:[%s1762_s13 + $0x10] sm:$0xff]  ;;  %v739_v48 = vld [vmem:[%s1781_s20] sm:$0xff] }
  0x6b   : > { %v740_v49 = vld [vmem:[%s1781_s20 + $0x8] sm:$0xff]  ;;  %v741_v50 = vld [vmem:[%s1781_s20 + $0x10] sm:$0xff]  ;;  %v595_v51 = vld [vmem:[%s1762_s13] sm:$0xff] }
  0x6c   : > { %v742_v52 = vld [vmem:[%s1781_s20 + $0x18] sm:$0xff]  ;;  %v743_v57 = vld [vmem:[%s1781_s20 + $0x20] sm:$0xff]  ;;  %v625_v60 = vld [vmem:[%s1757_s9 + $0x70] sm:$0xff] }
  0x6d   : > { %v626_v54 = vld [vmem:[%s1757_s9 + $0x78] sm:$0xff]  ;;  %v596_v61 = vld [vmem:[%s1762_s13 + $0x8] sm:$0xff]  ;;  %v623_v3 = vld [vmem:[%s1757_s9 + $0x60] sm:$0xff] }
  0x6e   : > { %v624_v62 = vld [vmem:[%s1757_s9 + $0x68] sm:$0xff]  ;;  %v622_v2 = vld [vmem:[%s1757_s9 + $0x58] sm:$0xff]  ;;  %v621_v6 = vld [vmem:[%s1757_s9 + $0x50] sm:$0xff] }
  0x6f   : > { %v744_v4 = vld [vmem:[%s1781_s20 + $0x28] sm:$0xff]  ;;  %v745_v15 = vld [vmem:[%s1781_s20 + $0x30] sm:$0xff]  ;;  %v619_v16 = vld [vmem:[%s1757_s9 + $0x40] sm:$0xff] }
  0x70   : > { %699 = vperm.xlu0 %1539, %v609_v37   ;;  %689 = vperm.xlu1 %1540, %v607_v38   ;;  %v620_v10 = vld [vmem:[%s1757_s9 + $0x48] sm:$0xff]  ;;  %v618_v17 = vld [vmem:[%s1757_s9 + $0x38] sm:$0xff]  ;;  %v617_v20 = vld [vmem:[%s1757_s9 + $0x30] sm:$0xff] }
  0x71   : > { %v616_v24 = vld [vmem:[%s1757_s9 + $0x28] sm:$0xff]  ;;  %v615_v25 = vld [vmem:[%s1757_s9 + $0x20] sm:$0xff]  ;;  %v746_v27 = vld [vmem:[%s1781_s20 + $0x38] sm:$0xff] }
  0x72   : > { %679 = vperm.xlu2 %1541, %v605_v39   ;;  %v614_v30 = vld [vmem:[%s1757_s9 + $0x18] sm:$0xff]  ;;  %v613_v32 = vld [vmem:[%s1757_s9 + $0x10] sm:$0xff]  ;;  %v747_v36 = vld [vmem:[%s1781_s20 + $0x40] sm:$0xff] }
  0x73   : > { %v748_v37 = vld [vmem:[%s1781_s20 + $0x48] sm:$0xff]  ;;  %v749_v38 = vld [vmem:[%s1781_s20 + $0x50] sm:$0xff]  ;;  %v750_v39 = vld [vmem:[%s1781_s20 + $0x58] sm:$0xff] }
  0x78   : > { %674 = vperm.xlu0 %1539, %v604_v40   ;;  %669 = vperm.xlu1 %1540, %v603_v41   ;;  %v751_v40 = vld [vmem:[%s1781_s20 + $0x60] sm:$0xff]  ;;  %v752_v41 = vld [vmem:[%s1781_s20 + $0x68] sm:$0xff] }
  0x7a   : > { %664 = vperm.xlu2 %1541, %v602_v42   ;;  %v753_v42 = vld [vmem:[%s1781_s20 + $0x70] sm:$0xff] }
  0x80   : > { %659 = vperm.xlu0 %1539, %v601_v43   ;;  %654 = vperm.xlu1 %1540, %v600_v44   ;;  %v754_v43 = vld [vmem:[%s1781_s20 + $0x78] sm:$0xff]  ;;  %v612_v44 = vld [vmem:[%s1757_s9 + $0x8] sm:$0xff] }
  0x82   : > { %649 = vperm.xlu2 %1541, %v599_v45  }
  0x88   : > { %644 = vperm.xlu0 %1539, %v598_v46   ;;  %639 = vperm.xlu1 %1540, %v597_v47   ;;  %v611_v47 = vld [vmem:[%s1757_s9] sm:$0xff] }
  0x8a   : > { %634 = vperm.xlu2 %1541, %v596_v61   ;;  %v730_v61 = vld [vmem:[%s1779_s10 + $0x38] sm:$0xff] }
  0x90   : > { %629 = vperm.xlu0 %1539, %v595_v51   ;;  %v724_v51 = vld [vmem:[%s1779_s10 + $0x8] sm:$0xff] }
  0xbd   : > { %771 = vxpose.xlu1.b32.start [1/16] %v739_v48, 128 }
  0xc4   : > { %v685_v53 = vpop.permute.xlu2 %684 }
  0xc5   : > { %772 = vxpose.xlu1.b32.cont [2/16] %v740_v49, 128  ;;  %v718_v7 = vmul.f32 %v685_v53, %v622_v2  ;;  %v726_v53 = vld [vmem:[%s1779_s10 + $0x18] sm:$0xff] }
  0xcc   : > { %v680_v59 = vpop.permute.xlu2 %679 }
  0xcd   : > { %773 = vxpose.xlu1.b32.cont [3/16] %v741_v50, 128  ;;  %v717_v9 = vmul.f32 %v680_v59, %v621_v6  ;;  %v723_v50 = vld [vmem:[%s1779_s10] sm:$0xff]  ;;  %v729_v59 = vld [vmem:[%s1779_s10 + $0x30] sm:$0xff] }
  0xd4   : > { %v665_v11 = vpop.permute.xlu2 %664 }
  0xd5   : > { %774 = vxpose.xlu1.b32.cont [4/16] %v742_v52, 128  ;;  %v714_v19 = vmul.f32 %v665_v11, %v618_v17  ;;  %v725_v52 = vld [vmem:[%s1779_s10 + $0x10] sm:$0xff] }
  0xd6   : > { %v737_v11 = vld [vmem:[%s1779_s10 + $0x70] sm:$0xff] }
  0xda   : > { %v705_v55 = vpop.permute.xlu0 %704  ;;  %v695_v56 = vpop.permute.xlu1 %694 }
  0xdb   : > { %v722_v58 = vmul.f32 %v705_v55, %v626_v54  ;;  %v720_v5 = vmul.f32 %v695_v56, %v624_v62  ;;  %v727_v55 = vld [vmem:[%s1779_s10 + $0x20] sm:$0xff] }
  0xdc   : > { %v650_v26 = vpop.permute.xlu2 %649 }
  0xdd   : > { %775 = vxpose.xlu1.b32.cont [5/16] %v743_v57, 128  ;;  %803 = vmatpush.msra.mxu0 %v722_v58  ;;  %v711_v29 = vmul.f32 %v650_v26, %v615_v25  ;;  %v728_v57 = vld [vmem:[%s1779_s10 + $0x28] sm:$0xff] }
  0xde   : > { %1448 = vmatpush.msra.mxu2 %v722_v58  ;;  %868 = vmatpush.msra.mxu1 %v722_v58 }
  0xdf   : > { %1464 = vmatpush.msra.mxu3 %v722_v58 }
  0xe2   : > { %v700_v63 = vpop.permute.xlu0 %699  ;;  %v690_v0 = vpop.permute.xlu1 %689 }
  0xe3   : > { %v721_v1 = vmul.f32 %v700_v63, %v625_v60  ;;  %v719_v8 = vmul.f32 %v690_v0, %v623_v3  ;;  %v731_v63 = vld [vmem:[%s1779_s10 + $0x40] sm:$0xff]  ;;  %v733_v3 = vld [vmem:[%s1779_s10 + $0x50] sm:$0xff] }
  0xe4   : > { %v635_v45 = vpop.permute.xlu2 %634 }
  0xe5   : > { %804 = vmatpush.msra.mxu0 %v721_v1  ;;  %1449 = vmatpush.msra.mxu2 %v721_v1  ;;  %v708_v46 = vmul.f32 %v635_v45, %v612_v44  ;;  %v759_v45 = vld [vmem:[%s1777_s0 + $0x20] sm:$0xff] }
  0xe6   : > { %869 = vmatpush.msra.mxu1 %v721_v1  ;;  %1465 = vmatpush.msra.mxu3 %v721_v1  ;;  %v732_v1 = vld [vmem:[%s1779_s10 + $0x48] sm:$0xff] }
  0xe7   : > { %776 = vxpose.xlu1.b32.cont [6/16] %v744_v4, 128  ;;  %805 = vmatpush.msra.mxu0 %v720_v5 }
  0xe8   : > { %1450 = vmatpush.msra.mxu2 %v720_v5  ;;  %870 = vmatpush.msra.mxu1 %v720_v5 }
  0xe9   : > { %1466 = vmatpush.msra.mxu3 %v720_v5  ;;  %806 = vmatpush.msra.mxu0 %v719_v8  ;;  %v734_v5 = vld [vmem:[%s1779_s10 + $0x58] sm:$0xff] }
  0xea   : > { %1451 = vmatpush.msra.mxu2 %v719_v8  ;;  %871 = vmatpush.msra.mxu1 %v719_v8  ;;  %v675_v12 = vpop.permute.xlu0 %674  ;;  %v670_v13 = vpop.permute.xlu1 %669 }
  0xeb   : > { %1467 = vmatpush.msra.mxu3 %v719_v8  ;;  %807 = vmatpush.msra.mxu0 %v718_v7  ;;  %v716_v14 = vmul.f32 %v675_v12, %v620_v10  ;;  %v715_v18 = vmul.f32 %v670_v13, %v619_v16  ;;  %v738_v13 = vld [vmem:[%s1779_s10 + $0x78] sm:$0xff] }
  0xec   : > { %1452 = vmatpush.msra.mxu2 %v718_v7  ;;  %872 = vmatpush.msra.mxu1 %v718_v7 }
  0xed   : > { %1468 = vmatpush.msra.mxu3 %v718_v7  ;;  %808 = vmatpush.msra.mxu0 %v717_v9  ;;  %v735_v7 = vld [vmem:[%s1779_s10 + $0x60] sm:$0xff] }
  0xee   : > { %1453 = vmatpush.msra.mxu2 %v717_v9  ;;  %873 = vmatpush.msra.mxu1 %v717_v9 }
  0xef   : > { %1469 = vmatpush.msra.mxu3 %v717_v9  ;;  %777 = vxpose.xlu1.b32.cont [7/16] %v745_v15, 128  ;;  %v736_v9 = vld [vmem:[%s1779_s10 + $0x68] sm:$0xff] }
  0xf0   : > { %809 = vmatpush.msra.mxu0 %v716_v14  ;;  %1454 = vmatpush.msra.mxu2 %v716_v14 }
  0xf1   : > { %874 = vmatpush.msra.mxu1 %v716_v14  ;;  %1470 = vmatpush.msra.mxu3 %v716_v14 }
  0xf2   : > { %810 = vmatpush.msra.mxu0 %v715_v18  ;;  %1455 = vmatpush.msra.mxu2 %v715_v18  ;;  %v660_v21 = vpop.permute.xlu0 %659  ;;  %v655_v22 = vpop.permute.xlu1 %654 }
  0xf3   : > { %875 = vmatpush.msra.mxu1 %v715_v18  ;;  %1471 = vmatpush.msra.mxu3 %v715_v18  ;;  %v713_v23 = vmul.f32 %v660_v21, %v617_v20  ;;  %v712_v28 = vmul.f32 %v655_v22, %v616_v24  ;;  %v755_v22 = vld [vmem:[%s1777_s0] sm:$0xff] }
  0xf4   : > { %811 = vmatpush.msra.mxu0 %v714_v19  ;;  %1456 = vmatpush.msra.mxu2 %v714_v19 }
  0xf5   : > { %876 = vmatpush.msra.mxu1 %v714_v19  ;;  %1472 = vmatpush.msra.mxu3 %v714_v19 }
  0xf6   : > { %812 = vmatpush.msra.mxu0 %v713_v23  ;;  %1457 = vmatpush.msra.mxu2 %v713_v23 }
  0xf7   : > { %877 = vmatpush.msra.mxu1 %v713_v23  ;;  %1473 = vmatpush.msra.mxu3 %v713_v23 }
  0xf8   : > { %778 = vxpose.xlu1.b32.cont [8/16] %v746_v27, 128  ;;  %813 = vmatpush.msra.mxu0 %v712_v28 }
  0xf9   : > { %1458 = vmatpush.msra.mxu2 %v712_v28  ;;  %878 = vmatpush.msra.mxu1 %v712_v28 }
  0xfa   : > { %1474 = vmatpush.msra.mxu3 %v712_v28  ;;  %v645_v31 = vpop.permute.xlu0 %644  ;;  %v640_v33 = vpop.permute.xlu1 %639  ;;  %814 = vmatpush.msra.mxu0 %v711_v29  ;;  %v756_v28 = vld [vmem:[%s1777_s0 + $0x8] sm:$0xff] }
  0xfb   : > { %v710_v34 = vmul.f32 %v645_v31, %v614_v30  ;;  %1459 = vmatpush.msra.mxu2 %v711_v29  ;;  %879 = vmatpush.msra.mxu1 %v711_v29  ;;  %v709_v35 = vmul.f32 %v640_v33, %v613_v32 }
  0xfc   : > { %1475 = vmatpush.msra.mxu3 %v711_v29 }
  0xfd   : > { %815 = vmatpush.msra.mxu0 %v710_v34  ;;  %1460 = vmatpush.msra.mxu2 %v710_v34 }
  0xfe   : > { %880 = vmatpush.msra.mxu1 %v710_v34  ;;  %1476 = vmatpush.msra.mxu3 %v710_v34  ;;  %v757_v34 = vld [vmem:[%s1777_s0 + $0x10] sm:$0xff] }
  0xff   : > { %816 = vmatpush.msra.mxu0 %v709_v35  ;;  %1461 = vmatpush.msra.mxu2 %v709_v35 }
 0x100   : > { %779 = vxpose.xlu1.b32.cont [9/16] %v747_v36, 128  ;;  %881 = vmatpush.msra.mxu1 %v709_v35 }
 0x101   : > { %1477 = vmatpush.msra.mxu3 %v709_v35  ;;  %817 = vmatpush.msra.mxu0 %v708_v46 }
 0x102   : > { %882 = vmatpush.msra.mxu1 %v708_v46  ;;  %v630_v48 = vpop.permute.xlu0 %629  ;;  %1462 = vmatpush.msra.mxu2 %v708_v46 }
 0x103   : > { %1478 = vmatpush.msra.mxu3 %v708_v46  ;;  %v707_v49 = vmul.f32 %v630_v48, %v611_v47 }
 0x105   : > { %818 = vmatpush.msra.mxu0 %v707_v49  ;;  %883 = vmatpush.msra.mxu1 %v707_v49 }
 0x106   : > { %1463 = vmatpush.msra.mxu2 %v707_v49  ;;  %1479 = vmatpush.msra.mxu3 %v707_v49 }
 0x107   : > { %884 = vmatmul.f32.vlgmr.msra.gmra.mxu1 %v723_v50  ;;  %908 = vmatmul.f32.vlgmr.msra.gmra.mxu3 %v731_v63 }
 0x108   : > { %780 = vxpose.xlu1.b32.cont [10/16] %v748_v37, 128 }
 0x10f   : > { %887 = vmatmul.f32.gmra.mxu1 %v724_v51  ;;  %911 = vmatmul.f32.gmra.mxu3 %v732_v1  ;;  %v760_v51 = vld [vmem:[%s1777_s0 + $0x28] sm:$0xff] }
 0x110   : > { %781 = vxpose.xlu1.b32.cont [11/16] %v749_v38, 128 }
 0x117   : > { %890 = vmatmul.f32.gmra.mxu1 %v725_v52  ;;  %914 = vmatmul.f32.gmra.mxu3 %v733_v3 }
 0x118   : > { %782 = vxpose.xlu1.b32.cont [12/16] %v750_v39, 128 }
 0x11f   : > { %893 = vmatmul.f32.gmra.mxu1 %v726_v53  ;;  %917 = vmatmul.f32.gmra.mxu3 %v734_v5 }
 0x120   : > { %783 = vxpose.xlu1.b32.cont [13/16] %v751_v40, 128  ;;  %v758_v40 = vld [vmem:[%s1777_s0 + $0x18] sm:$0xff] }
 0x127   : > { %896 = vmatmul.f32.gmra.mxu1 %v727_v55  ;;  %920 = vmatmul.f32.gmra.mxu3 %v735_v7 }
 0x128   : > { %784 = vxpose.xlu1.b32.cont [14/16] %v752_v41, 128 }
 0x12f   : > { %899 = vmatmul.f32.gmra.mxu1 %v728_v57  ;;  %923 = vmatmul.f32.gmra.mxu3 %v736_v9  ;;  %v761_v57 = vld [vmem:[%s1777_s0 + $0x30] sm:$0xff] }
 0x130   : > { %785 = vxpose.xlu1.b32.cont [15/16] %v753_v42, 128 }
 0x137   : > { %902 = vmatmul.f32.gmra.mxu1 %v729_v59  ;;  %926 = vmatmul.f32.gmra.mxu3 %v737_v11 }
 0x138   : > { %786 = vxpose.xlu1.b32.end [16/16] %v754_v43, 128 }
 0x13f   : > { %905 = vmatmul.f32.gmra.mxu1 %v730_v61  ;;  %929 = vmatmul.f32.gmra.mxu3 %v738_v13 }
 0x164   : > { %v787_v54 = vpop.trf.xlu1 }
 0x165   : > { %819 = vmatmul.f32.vlgmr.msra.gmra.mxu0 %v787_v54 }
 0x16c   : > { %v788_v56 = vpop.trf.xlu1 }
 0x16d   : > { %822 = vmatmul.f32.gmra.mxu0 %v788_v56 }
 0x174   : > { %v789_v58 = vpop.trf.xlu1 }
 0x175   : > { %825 = vmatmul.f32.gmra.mxu0 %v789_v58 }
 0x17c   : > { %v790_v60 = vpop.trf.xlu1 }
 0x17d   : > { %828 = vmatmul.f32.gmra.mxu0 %v790_v60 }
 0x184   : > { %v791_v62 = vpop.trf.xlu1  ;;  %v885_v16 = vpop.f32.mrf.mxu1 }
 0x185   : > { %831 = vmatmul.f32.gmra.mxu0 %v791_v62 }
 0x18a   : > { %v909_v61 = vpop.f32.mrf.mxu3 }
 0x18c   : > { %v792_v0 = vpop.trf.xlu1  ;;  %v888_v19 = vpop.f32.mrf.mxu1 }
 0x18d   : > { %834 = vmatmul.f32.gmra.mxu0 %v792_v0  ;;  %v762_v0 = vld [vmem:[%s1777_s0 + $0x38] sm:$0xff] }
 0x192   : > { %v912_v3 = vpop.f32.mrf.mxu3 }
 0x194   : > { %v793_v2 = vpop.trf.xlu1  ;;  %v891_v24 = vpop.f32.mrf.mxu1 }
 0x195   : > { %837 = vmatmul.f32.gmra.mxu0 %v793_v2 }
 0x19c   : > { %v794_v4 = vpop.trf.xlu1  ;;  %v894_v31 = vpop.f32.mrf.mxu1 }
 0x19d   : > { %840 = vmatmul.f32.gmra.mxu0 %v794_v4 }
 0x1a4   : > { %v795_v6 = vpop.trf.xlu1  ;;  %v897_v38 = vpop.f32.mrf.mxu1 }
 0x1a5   : > { %843 = vmatmul.f32.vlgmr.msra.gmra.mxu2 %v795_v6  ;;  %v763_v6 = vld [vmem:[%s1777_s0 + $0x40] sm:$0xff] }
 0x1ac   : > { %v796_v8 = vpop.trf.xlu1  ;;  %v900_v46 = vpop.f32.mrf.mxu1 }
 0x1ad   : > { %846 = vmatmul.f32.gmra.mxu2 %v796_v8  ;;  %v915_v8 = vpop.f32.mrf.mxu3 }
 0x1b4   : > { %v797_v10 = vpop.trf.xlu1  ;;  %v903_v53 = vpop.f32.mrf.mxu1 }
 0x1b5   : > { %849 = vmatmul.f32.gmra.mxu2 %v797_v10 }
 0x1bc   : > { %v798_v12 = vpop.trf.xlu1  ;;  %v906_v60 = vpop.f32.mrf.mxu1 }
 0x1bd   : > { %852 = vmatmul.f32.gmra.mxu2 %v798_v12  ;;  %v764_v12 = vld [vmem:[%s1777_s0 + $0x48] sm:$0xff] }
 0x1c4   : > { %v799_v14 = vpop.trf.xlu1 }
 0x1c5   : > { %855 = vmatmul.f32.gmra.mxu2 %v799_v14 }
 0x1cc   : > { %v800_v15 = vpop.trf.xlu1 }
 0x1cd   : > { %858 = vmatmul.f32.gmra.mxu2 %v800_v15  ;;  %v918_v15 = vpop.f32.mrf.mxu3 }
 0x1d4   : > { %v801_v17 = vpop.trf.xlu1 }
 0x1d5   : > { %861 = vmatmul.f32.gmra.mxu2 %v801_v17 }
 0x1dc   : > { %v802_v18 = vpop.trf.xlu1 }
 0x1dd   : > { %864 = vmatmul.f32.gmra.mxu2 %v802_v18  ;;  %v765_v18 = vld [vmem:[%s1777_s0 + $0x50] sm:$0xff] }
 0x1e2   : > { %v820_v20 = vpop.f32.mrf.mxu0 }
 0x1e3   : > { %v886_v21 = vadd.f32 %v885_v16, %v820_v20 }
 0x1e5   : > { %v933_v23 = vmul.f32 0.5, %v886_v21 }
 0x1e7   : > { %v949_v25 = vadd.f32 %v933_v23, %v755_v22  ;;  %v921_v22 = vpop.f32.mrf.mxu3 }
 0x1e9   : > { %965 = vst [vmem:[%s1777_s0] sm:$0xff] %v949_v25 }
 0x1ea   : > { %v823_v26 = vpop.f32.mrf.mxu0 }
 0x1eb   : > { %v889_v27 = vadd.f32 %v888_v19, %v823_v26 }
 0x1ed   : > { %v934_v29 = vmul.f32 0.5, %v889_v27 }
 0x1ef   : > { %v950_v30 = vadd.f32 %v934_v29, %v756_v28  ;;  %v767_v29 = vld [vmem:[%s1777_s0 + $0x60] sm:$0xff] }
 0x1f1   : > { %966 = vst [vmem:[%s1777_s0 + $0x8] sm:$0xff] %v950_v30  ;;  %v924_v30 = vpop.f32.mrf.mxu3 }
 0x1f2   : > { %v826_v32 = vpop.f32.mrf.mxu0 }
 0x1f3   : > { %v892_v33 = vadd.f32 %v891_v24, %v826_v32  ;;  %v766_v24 = vld [vmem:[%s1777_s0 + $0x58] sm:$0xff] }
 0x1f5   : > { %v935_v35 = vmul.f32 0.5, %v892_v33 }
 0x1f7   : > { %v951_v36 = vadd.f32 %v935_v35, %v757_v34  ;;  %v768_v35 = vld [vmem:[%s1777_s0 + $0x68] sm:$0xff] }
 0x1f9   : > { %967 = vst [vmem:[%s1777_s0 + $0x10] sm:$0xff] %v951_v36 }
 0x1fa   : > { %v829_v37 = vpop.f32.mrf.mxu0 }
 0x1fb   : > { %v895_v39 = vadd.f32 %v894_v31, %v829_v37  ;;  %v927_v37 = vpop.f32.mrf.mxu3 }
 0x1fd   : > { %v936_v41 = vmul.f32 0.5, %v895_v39 }
 0x1ff   : > { %v952_v42 = vadd.f32 %v936_v41, %v758_v40  ;;  %v769_v41 = vld [vmem:[%s1777_s0 + $0x70] sm:$0xff] }
 0x201   : > { %968 = vst [vmem:[%s1777_s0 + $0x18] sm:$0xff] %v952_v42 }
 0x202   : > { %v832_v43 = vpop.f32.mrf.mxu0 }
 0x203   : > { %v898_v44 = vadd.f32 %v897_v38, %v832_v43 }
 0x205   : > { %v937_v47 = vmul.f32 0.5, %v898_v44  ;;  %v930_v44 = vpop.f32.mrf.mxu3 }
 0x207   : > { %v953_v48 = vadd.f32 %v937_v47, %v759_v45  ;;  %v770_v47 = vld [vmem:[%s1777_s0 + $0x78] sm:$0xff] }
 0x209   : > { %969 = vst [vmem:[%s1777_s0 + $0x20] sm:$0xff] %v953_v48 }
 0x20a   : > { %v835_v49 = vpop.f32.mrf.mxu0 }
 0x20b   : > { %v901_v50 = vadd.f32 %v900_v46, %v835_v49 }
 0x20d   : > { %v938_v52 = vmul.f32 0.5, %v901_v50 }
 0x20f   : > { %v954_v54 = vadd.f32 %v938_v52, %v760_v51 }
 0x211   : > { %970 = vst [vmem:[%s1777_s0 + $0x28] sm:$0xff] %v954_v54 }
 0x212   : > { %v838_v55 = vpop.f32.mrf.mxu0 }
 0x213   : > { %v904_v56 = vadd.f32 %v903_v53, %v838_v55 }
 0x215   : > { %v939_v58 = vmul.f32 0.5, %v904_v56 }
 0x217   : > { %v955_v59 = vadd.f32 %v939_v58, %v761_v57 }
 0x219   : > { %971 = vst [vmem:[%s1777_s0 + $0x30] sm:$0xff] %v955_v59 }
 0x21a   : > { %v841_v62 = vpop.f32.mrf.mxu0 }
 0x21b   : > { %v907_v63 = vadd.f32 %v906_v60, %v841_v62 }
 0x21d   : > { %v940_v1 = vmul.f32 0.5, %v907_v63 }
 0x21f   : > { %v956_v2 = vadd.f32 %v940_v1, %v762_v0 }
 0x221   : > { %972 = vst [vmem:[%s1777_s0 + $0x38] sm:$0xff] %v956_v2 }
 0x228   : > { %v844_v4 = vpop.f32.mrf.mxu2 }
 0x229   : > { %v910_v5 = vadd.f32 %v909_v61, %v844_v4 }
 0x22b   : > { %v941_v7 = vmul.f32 0.5, %v910_v5 }
 0x22d   : > { %v957_v9 = vadd.f32 %v941_v7, %v763_v6 }
 0x22f   : > { %973 = vst [vmem:[%s1777_s0 + $0x40] sm:$0xff] %v957_v9 }
 0x230   : > { %v847_v10 = vpop.f32.mrf.mxu2 }
 0x231   : > { %v913_v11 = vadd.f32 %v912_v3, %v847_v10 }
 0x233   : > { %v942_v13 = vmul.f32 0.5, %v913_v11 }
 0x235   : > { %v958_v14 = vadd.f32 %v942_v13, %v764_v12 }
 0x237   : > { %974 = vst [vmem:[%s1777_s0 + $0x48] sm:$0xff] %v958_v14 }
 0x238   : > { %v850_v16 = vpop.f32.mrf.mxu2 }
 0x239   : > { %v916_v17 = vadd.f32 %v915_v8, %v850_v16 }
 0x23b   : > { %v943_v19 = vmul.f32 0.5, %v916_v17 }
 0x23d   : > { %v959_v20 = vadd.f32 %v943_v19, %v765_v18 }
 0x23f   : > { %975 = vst [vmem:[%s1777_s0 + $0x50] sm:$0xff] %v959_v20 }
 0x240   : > { %v853_v21 = vpop.f32.mrf.mxu2 }
 0x241   : > { %v919_v23 = vadd.f32 %v918_v15, %v853_v21 }
 0x243   : > { %v944_v25 = vmul.f32 0.5, %v919_v23 }
 0x245   : > { %v960_v26 = vadd.f32 %v944_v25, %v766_v24 }
 0x247   : > { %976 = vst [vmem:[%s1777_s0 + $0x58] sm:$0xff] %v960_v26 }
 0x248   : > { %v856_v27 = vpop.f32.mrf.mxu2 }
 0x249   : > { %v922_v28 = vadd.f32 %v921_v22, %v856_v27 }
 0x24b   : > { %v945_v31 = vmul.f32 0.5, %v922_v28 }
 0x24d   : > { %v961_v32 = vadd.f32 %v945_v31, %v767_v29 }
 0x24f   : > { %977 = vst [vmem:[%s1777_s0 + $0x60] sm:$0xff] %v961_v32 }
 0x250   : > { %v859_v33 = vpop.f32.mrf.mxu2 }
 0x251   : > { %v925_v34 = vadd.f32 %v924_v30, %v859_v33 }
 0x253   : > { %v946_v36 = vmul.f32 0.5, %v925_v34 }
 0x255   : > { %v962_v38 = vadd.f32 %v946_v36, %v768_v35 }
 0x257   : > { %978 = vst [vmem:[%s1777_s0 + $0x68] sm:$0xff] %v962_v38 }
 0x258   : > { %v862_v39 = vpop.f32.mrf.mxu2 }
 0x259   : > { %v928_v40 = vadd.f32 %v927_v37, %v862_v39 }
 0x25b   : > { %v947_v42 = vmul.f32 0.5, %v928_v40 }
 0x25d   : > { %v963_v43 = vadd.f32 %v947_v42, %v769_v41 }
 0x25f   : > { %979 = vst [vmem:[%s1777_s0 + $0x70] sm:$0xff] %v963_v43 }
 0x260   : > { %v865_v45 = vpop.f32.mrf.mxu2 }
 0x261   : > { %v931_v46 = vadd.f32 %v930_v44, %v865_v45 }
 0x263   : > { %v948_v48 = vmul.f32 0.5, %v931_v46  ;;  %984 = sbr.rel (%p1443_p13) target bundleno = 820 (0x334), region = 128 }
 0x265   : > { %v964_v49 = vadd.f32 %v948_v48, %v770_v47 }
 0x267   : > { %980 = vst [vmem:[%s1777_s0 + $0x78] sm:$0xff] %v964_v49 }
 0x268   : > { %v989_v50 = vld [vmem:[%s1772_s17 + $0x20] sm:$0xff]  ;;  %v987_v51 = vld [vmem:[%s1772_s17 + $0x10] sm:$0xff]  ;;  %v1603_v53 = vmov 0   ;;  %v990_v54 = vld [vmem:[%s1772_s17 + $0x28] sm:$0xff] }
 0x269   : > { %v985_v52 = vld [vmem:[%s1772_s17] sm:$0xff]  ;;  %1544 = vset.pattern.permute.xlu2 %v1603_v53  ;;  %1543 = vset.pattern.permute.xlu1 %v1603_v53  ;;  %v988_v55 = vld [vmem:[%s1772_s17 + $0x18] sm:$0xff]  ;;  %v986_v56 = vld [vmem:[%s1772_s17 + $0x8] sm:$0xff]  ;;  %v1117_v5 = vmul.f32 %v989_v50, %v989_v50  ;;  %v1115_v6 = vmul.f32 %v987_v51, %v987_v51  ;;  %v1118_v9 = vmul.f32 %v990_v54, %v990_v54 }
 0x26a   : > { %1542 = vset.pattern.permute.xlu0 %v1603_v53  ;;  %1039 = vperm.xlu2 %1544, %v989_v50   ;;  %v993_v57 = vld [vmem:[%s1772_s17 + $0x40] sm:$0xff]  ;;  %v992_v58 = vld [vmem:[%s1772_s17 + $0x38] sm:$0xff]  ;;  %v991_v59 = vld [vmem:[%s1772_s17 + $0x30] sm:$0xff]  ;;  %v1114_v2 = vmul.f32 %v986_v56, %v986_v56  ;;  %v1113_v3 = vmul.f32 %v985_v52, %v985_v52  ;;  %v1116_v7 = vmul.f32 %v988_v55, %v988_v55 }
 0x26b   : > { %1029 = vperm.xlu1 %1543, %v987_v51   ;;  %1019 = vperm.xlu0 %1542, %v985_v52   ;;  %v996_v60 = vld [vmem:[%s1772_s17 + $0x58] sm:$0xff]  ;;  %v995_v61 = vld [vmem:[%s1772_s17 + $0x50] sm:$0xff]  ;;  %v994_v62 = vld [vmem:[%s1772_s17 + $0x48] sm:$0xff]  ;;  %v1120_v8 = vmul.f32 %v992_v58, %v992_v58  ;;  %v1119_v10 = vmul.f32 %v991_v59, %v991_v59  ;;  %v1121_v12 = vmul.f32 %v993_v57, %v993_v57 }
 0x26c   : > { %v999_v63 = vld [vmem:[%s1772_s17 + $0x70] sm:$0xff]  ;;  %v998_v0 = vld [vmem:[%s1772_s17 + $0x68] sm:$0xff]  ;;  %v997_v1 = vld [vmem:[%s1772_s17 + $0x60] sm:$0xff]  ;;  %v1123_v11 = vmul.f32 %v995_v61, %v995_v61  ;;  %v1122_v13 = vmul.f32 %v994_v62, %v994_v62  ;;  %v1124_v15 = vmul.f32 %v996_v60, %v996_v60 }
 0x26d   : > { %v1000_v4 = vld [vmem:[%s1772_s17 + $0x78] sm:$0xff]  ;;  %v1126_v14 = vmul.f32 %v998_v0, %v998_v0  ;;  %v1125_v16 = vmul.f32 %v997_v1, %v997_v1  ;;  %v1127_v17 = vmul.f32 %v999_v63, %v999_v63  ;;  %v1002_v28 = vld [vmem:[%s1777_s0 + $0x8] sm:$0xff]  ;;  %v1005_v36 = vld [vmem:[%s1777_s0 + $0x20] sm:$0xff] }
 0x26e   : > { %v1128_v18 = vmul.f32 %v1000_v4, %v1000_v4  ;;  %v1130_v29 = vld [vmem:[%s1767_s30 + $0x8] sm:$0xff]  ;;  %v1133_v37 = vld [vmem:[%s1767_s30 + $0x20] sm:$0xff]  ;;  %v1008_v44 = vld [vmem:[%s1777_s0 + $0x38] sm:$0xff] }
 0x26f   : > { %v1136_v45 = vld [vmem:[%s1767_s30 + $0x38] sm:$0xff]  ;;  %v1011_v52 = vld [vmem:[%s1777_s0 + $0x50] sm:$0xff] }
 0x270   : > { %v1139_v53 = vld [vmem:[%s1767_s30 + $0x50] sm:$0xff] }
 0x272   : > { %1044 = vperm.xlu2 %1544, %v990_v54   ;;  %v1001_v54 = vld [vmem:[%s1777_s0] sm:$0xff] }
 0x273   : > { %1034 = vperm.xlu1 %1543, %v988_v55   ;;  %1024 = vperm.xlu0 %1542, %v986_v56   ;;  %v1129_v55 = vld [vmem:[%s1767_s30] sm:$0xff] }
 0x27a   : > { %1059 = vperm.xlu2 %1544, %v993_v57  }
 0x27b   : > { %1054 = vperm.xlu1 %1543, %v992_v58   ;;  %1049 = vperm.xlu0 %1542, %v991_v59  }
 0x282   : > { %1074 = vperm.xlu2 %1544, %v996_v60  }
 0x283   : > { %1069 = vperm.xlu1 %1543, %v995_v61   ;;  %1064 = vperm.xlu0 %1542, %v994_v62  }
 0x28a   : > { %1089 = vperm.xlu2 %1544, %v999_v63  }
 0x28b   : > { %1084 = vperm.xlu1 %1543, %v998_v0   ;;  %1079 = vperm.xlu0 %1542, %v997_v1   ;;  %v1003_v1 = vld [vmem:[%s1777_s0 + $0x10] sm:$0xff] }
 0x292   : > { %1152 = vperm.xlu2 %1544, %v1114_v2   ;;  %v1014_v2 = vld [vmem:[%s1777_s0 + $0x68] sm:$0xff] }
 0x293   : > { %1094 = vperm.xlu0 %1542, %v1000_v4   ;;  %1147 = vperm.xlu1 %1543, %v1113_v3   ;;  %v1142_v3 = vld [vmem:[%s1767_s30 + $0x68] sm:$0xff]  ;;  %v1004_v4 = vld [vmem:[%s1777_s0 + $0x18] sm:$0xff] }
 0x29a   : > { %1167 = vperm.xlu2 %1544, %v1117_v5   ;;  %v1131_v5 = vld [vmem:[%s1767_s30 + $0x10] sm:$0xff] }
 0x29b   : > { %1157 = vperm.xlu0 %1542, %v1115_v6   ;;  %1162 = vperm.xlu1 %1543, %v1116_v7   ;;  %v1132_v6 = vld [vmem:[%s1767_s30 + $0x18] sm:$0xff] }
 0x2a2   : > { %1182 = vperm.xlu2 %1544, %v1120_v8  }
 0x2a3   : > { %1172 = vperm.xlu0 %1542, %v1118_v9   ;;  %1177 = vperm.xlu1 %1543, %v1119_v10  }
 0x2aa   : > { %1197 = vperm.xlu2 %1544, %v1123_v11  }
 0x2ab   : > { %1187 = vperm.xlu0 %1542, %v1121_v12   ;;  %1192 = vperm.xlu1 %1543, %v1122_v13  }
 0x2b2   : > { %1212 = vperm.xlu2 %1544, %v1126_v14  }
 0x2b3   : > { %1202 = vperm.xlu0 %1542, %v1124_v15   ;;  %1207 = vperm.xlu1 %1543, %v1125_v16  }
 0x2bb   : > { %1217 = vperm.xlu0 %1542, %v1127_v17   ;;  %1222 = vperm.xlu1 %1543, %v1128_v18  }
 0x2c4   : > { %v1040_v19 = vpop.permute.xlu2 %1039 }
 0x2c5   : > { %v1101_v39 = vmul.f32 %v1040_v19, %v1005_v36  ;;  %v1006_v19 = vld [vmem:[%s1777_s0 + $0x28] sm:$0xff]  ;;  %v1009_v36 = vld [vmem:[%s1777_s0 + $0x40] sm:$0xff] }
 0x2cc   : > { %v1913_v20 = vpop.permute.xlu2 %1044 }
 0x2d4   : > { %v1915_v21 = vpop.permute.xlu2 %1059 }
 0x2dc   : > { %v1917_v22 = vpop.permute.xlu2 %1074 }
 0x2dd   : > { %v1030_v23 = vpop.permute.xlu1 %1029  ;;  %v1020_v24 = vpop.permute.xlu0 %1019 }
 0x2de   : > { %v1097_v61 = vmul.f32 %v1020_v24, %v1001_v54  ;;  %v1099_v12 = vmul.f32 %v1030_v23, %v1003_v1  ;;  %v1007_v24 = vld [vmem:[%s1777_s0 + $0x30] sm:$0xff] }
 0x2e4   : > { %v1919_v25 = vpop.permute.xlu2 %1089 }
 0x2e5   : > { %v1035_v26 = vpop.permute.xlu1 %1034  ;;  %v1025_v27 = vpop.permute.xlu0 %1024 }
 0x2e6   : > { %v1098_v31 = vmul.f32 %v1025_v27, %v1002_v28  ;;  %v1100_v13 = vmul.f32 %v1035_v26, %v1004_v4  ;;  %v1134_v27 = vld [vmem:[%s1767_s30 + $0x28] sm:$0xff]  ;;  %v1135_v28 = vld [vmem:[%s1767_s30 + $0x30] sm:$0xff] }
 0x2ec   : > { %v1153_v30 = vpop.permute.xlu2 %1152 }
 0x2ed   : > { %v1055_v32 = vpop.permute.xlu1 %1054  ;;  %v1226_v33 = vmul.f32 %v1153_v30, %v1130_v29  ;;  %v1923_v34 = vpop.permute.xlu0 %1049  ;;  %v1102_v29 = vmul.f32 %v1913_v20, %v1006_v19 }
 0x2ee   : > { %v1104_v47 = vmul.f32 %v1055_v32, %v1008_v44  ;;  %v1103_v30 = vmul.f32 %v1923_v34, %v1007_v24  ;;  %v1105_v34 = vmul.f32 %v1915_v21, %v1009_v36 }
 0x2ef   : > { %v1242_v35 = vadd.f32 %v1226_v33, %v1098_v31 }
 0x2f1   : > { %1258 = vst [vmem:[%s1777_s0 + $0x8] sm:$0xff] %v1242_v35 }
 0x2f4   : > { %v1168_v38 = vpop.permute.xlu2 %1167 }
 0x2f5   : > { %v1070_v40 = vpop.permute.xlu1 %1069  ;;  %v1229_v41 = vmul.f32 %v1168_v38, %v1133_v37  ;;  %v1928_v42 = vpop.permute.xlu0 %1064  ;;  %v1010_v37 = vld [vmem:[%s1777_s0 + $0x48] sm:$0xff]  ;;  %v1137_v38 = vld [vmem:[%s1767_s30 + $0x40] sm:$0xff] }
 0x2f6   : > { %v1107_v57 = vmul.f32 %v1070_v40, %v1011_v52 }
 0x2f7   : > { %v1245_v43 = vadd.f32 %v1229_v41, %v1101_v39  ;;  %v1138_v39 = vld [vmem:[%s1767_s30 + $0x48] sm:$0xff]  ;;  %v1106_v41 = vmul.f32 %v1928_v42, %v1010_v37 }
 0x2f9   : > { %1261 = vst [vmem:[%s1777_s0 + $0x20] sm:$0xff] %v1245_v43 }
 0x2fc   : > { %v1183_v46 = vpop.permute.xlu2 %1182 }
 0x2fd   : > { %v1085_v48 = vpop.permute.xlu1 %1084  ;;  %v1232_v49 = vmul.f32 %v1183_v46, %v1136_v45  ;;  %v1933_v50 = vpop.permute.xlu0 %1079 }
 0x2fe   : > { %v1110_v8 = vmul.f32 %v1085_v48, %v1014_v2  ;;  %v1013_v48 = vld [vmem:[%s1777_s0 + $0x60] sm:$0xff] }
 0x2ff   : > { %v1248_v51 = vadd.f32 %v1232_v49, %v1104_v47  ;;  %v1012_v47 = vld [vmem:[%s1777_s0 + $0x58] sm:$0xff] }
 0x300   : > { %v1140_v49 = vld [vmem:[%s1767_s30 + $0x58] sm:$0xff]  ;;  %v1108_v42 = vmul.f32 %v1917_v22, %v1012_v47 }
 0x301   : > { %1264 = vst [vmem:[%s1777_s0 + $0x38] sm:$0xff] %v1248_v51  ;;  %v1141_v51 = vld [vmem:[%s1767_s30 + $0x60] sm:$0xff] }
 0x304   : > { %v1198_v56 = vpop.permute.xlu2 %1197 }
 0x305   : > { %v1235_v58 = vmul.f32 %v1198_v56, %v1139_v53  ;;  %v1940_v59 = vpop.permute.xlu0 %1094  ;;  %v1148_v60 = vpop.permute.xlu1 %1147  ;;  %v1109_v53 = vmul.f32 %v1933_v50, %v1013_v48 }
 0x306   : > { %v1225_v62 = vmul.f32 %v1148_v60, %v1129_v55  ;;  %v1016_v60 = vld [vmem:[%s1777_s0 + $0x78] sm:$0xff] }
 0x307   : > { %v1251_v63 = vadd.f32 %v1235_v58, %v1107_v57  ;;  %v1015_v58 = vld [vmem:[%s1777_s0 + $0x70] sm:$0xff]  ;;  %v1112_v22 = vmul.f32 %v1940_v59, %v1016_v60 }
 0x308   : > { %v1241_v0 = vadd.f32 %v1225_v62, %v1097_v61  ;;  %v1143_v61 = vld [vmem:[%s1767_s30 + $0x70] sm:$0xff]  ;;  %v1144_v62 = vld [vmem:[%s1767_s30 + $0x78] sm:$0xff]  ;;  %v1111_v1 = vmul.f32 %v1919_v25, %v1015_v58 }
 0x309   : > { %1267 = vst [vmem:[%s1777_s0 + $0x50] sm:$0xff] %v1251_v63 }
 0x30a   : > { %1257 = vst [vmem:[%s1777_s0] sm:$0xff] %v1241_v0 }
 0x30c   : > { %v1213_v7 = vpop.permute.xlu2 %1212 }
 0x30d   : > { %v1238_v9 = vmul.f32 %v1213_v7, %v1142_v3  ;;  %v1158_v10 = vpop.permute.xlu0 %1157  ;;  %v1163_v11 = vpop.permute.xlu1 %1162 }
 0x30e   : > { %v1227_v14 = vmul.f32 %v1158_v10, %v1131_v5  ;;  %v1228_v15 = vmul.f32 %v1163_v11, %v1132_v6 }
 0x30f   : > { %v1254_v16 = vadd.f32 %v1238_v9, %v1110_v8 }
 0x310   : > { %v1243_v17 = vadd.f32 %v1227_v14, %v1099_v12  ;;  %v1244_v18 = vadd.f32 %v1228_v15, %v1100_v13 }
 0x311   : > { %1270 = vst [vmem:[%s1777_s0 + $0x68] sm:$0xff] %v1254_v16 }
 0x312   : > { %1259 = vst [vmem:[%s1777_s0 + $0x10] sm:$0xff] %v1243_v17 }
 0x313   : > { %1260 = vst [vmem:[%s1777_s0 + $0x18] sm:$0xff] %v1244_v18 }
 0x315   : > { %v1173_v23 = vpop.permute.xlu0 %1172  ;;  %v1178_v26 = vpop.permute.xlu1 %1177 }
 0x316   : > { %v1230_v31 = vmul.f32 %v1173_v23, %v1134_v27  ;;  %v1231_v32 = vmul.f32 %v1178_v26, %v1135_v28 }
 0x318   : > { %v1246_v33 = vadd.f32 %v1230_v31, %v1102_v29  ;;  %v1247_v35 = vadd.f32 %v1231_v32, %v1103_v30 }
 0x31a   : > { %1262 = vst [vmem:[%s1777_s0 + $0x28] sm:$0xff] %v1246_v33 }
 0x31b   : > { %1263 = vst [vmem:[%s1777_s0 + $0x30] sm:$0xff] %v1247_v35 }
 0x31d   : > { %v1188_v40 = vpop.permute.xlu0 %1187  ;;  %v1193_v20 = vpop.permute.xlu1 %1192 }
 0x31e   : > { %v1233_v43 = vmul.f32 %v1188_v40, %v1137_v38  ;;  %v1234_v44 = vmul.f32 %v1193_v20, %v1138_v39 }
 0x320   : > { %v1249_v45 = vadd.f32 %v1233_v43, %v1105_v34  ;;  %v1250_v46 = vadd.f32 %v1234_v44, %v1106_v41 }
 0x322   : > { %1265 = vst [vmem:[%s1777_s0 + $0x40] sm:$0xff] %v1249_v45 }
 0x323   : > { %1266 = vst [vmem:[%s1777_s0 + $0x48] sm:$0xff] %v1250_v46 }
 0x325   : > { %v1203_v52 = vpop.permute.xlu0 %1202  ;;  %v1208_v21 = vpop.permute.xlu1 %1207 }
 0x326   : > { %v1236_v54 = vmul.f32 %v1203_v52, %v1140_v49  ;;  %v1237_v55 = vmul.f32 %v1208_v21, %v1141_v51 }
 0x328   : > { %v1252_v56 = vadd.f32 %v1236_v54, %v1108_v42  ;;  %v1253_v57 = vadd.f32 %v1237_v55, %v1109_v53 }
 0x32a   : > { %1268 = vst [vmem:[%s1777_s0 + $0x58] sm:$0xff] %v1252_v56 }
 0x32b   : > { %1269 = vst [vmem:[%s1777_s0 + $0x60] sm:$0xff] %v1253_v57 }
 0x32d   : > { %v1218_v63 = vpop.permute.xlu0 %1217  ;;  %v1223_v0 = vpop.permute.xlu1 %1222 }
 0x32e   : > { %v1239_v2 = vmul.f32 %v1218_v63, %v1143_v61  ;;  %v1240_v50 = vmul.f32 %v1223_v0, %v1144_v62 }
 0x330   : > { %v1255_v3 = vadd.f32 %v1239_v2, %v1111_v1  ;;  %v1256_v4 = vadd.f32 %v1240_v50, %v1112_v22 }
 0x332   : > { %1271 = vst [vmem:[%s1777_s0 + $0x70] sm:$0xff] %v1255_v3 }
 0x333   : > { %1272 = vst [vmem:[%s1777_s0 + $0x78] sm:$0xff] %v1256_v4 }
 0x334 PF: > { %s16_s27 = sadd.s32 1, %s1599_s27   ;;  %s2016_s21 = smov %s1579_s22 }
 0x335   : > { %p13_p0 = scmp.ge.s32.totalorder %s16_s27, 6   ;;  %s2017_s22 = smov %s1694_s11 }
 0x336   : > { %s2018_s23 = smov %s1591_s25  ;;  %s2019_s24 = smov %s1595_s26 }
 0x337   : > { %s2020_s25 = smov %s2023_s28  ;;  %s2021_s26 = smov %s2027_s29 }
 0x338   :  { %15 = sbr.rel (!%p13_p0) target bundleno = 6 (0x6), region = 183 }

</bundles_post_ra>
